<compile_context>
chip_gen: v5e
topology: v5e:2x2
jax: 0.10.0
libtpu: 0.0.40
codegen_flags: <defaults>
</compile_context>

<pallas_src>
import functools

import jax
import jax.numpy as jnp
from jax.experimental import pallas as pl
from jax.experimental.pallas import tpu as pltpu

K = 15               # kernel_size of conv3x3 / conv5x5 / conv7x7
PAD = (K - 1) // 2   # 'same' padding for odd K
HALO = 3 * PAD       # receptive-field halo of the three chained K=15 convs
EPS = 1e-5
LANE = 128


def _round_up(x, m):
    return (x + m - 1) // m * m


# ---------------------------------------------------------------------------
# Phase 1: fused shortcut+conv branches + per-tile BN partial statistics.
# Grid = (batch, L-tile); both axes "parallel".
# ---------------------------------------------------------------------------
def _branch_kernel(x_ref, wstack_ref, bstack_ref, w5_ref, b5_ref, w7_ref, b7_ref,
                   sc_ref, cat_ref, stats_ref, *, n_filters, seq_len, tile_l):
    F = n_filters
    C7 = 7 * F
    TL = tile_l
    W5 = TL + 2 * PAD            # width over which c5 is computed
    W3 = TL + 4 * PAD            # width over which c3 (and sc rows) are computed
    TLH = TL + 6 * PAD           # x window width (with halo)
    mdt = wstack_ref.dtype       # MXU input dtype (bf16 fast path / f32 exact)

    l = pl.program_id(1)
    t0 = l * TL                                       # global start column of tile
    start = pl.multiple_of(t0, LANE)                  # lane-aligned offset into padded x
    # x block is the whole (halo-padded) row for this batch; slice the overlap window.
    xwin = x_ref[0, :, pl.ds(start, TLH)].astype(mdt)          # (C_in_p, TLH)

    def conv_mm(src, w_ref, b_ref, width):
        # src: (C_src, width + 2*PAD) in MXU dtype -> one im2col MXU matmul, f32 acc.
        a = jnp.concatenate([src[:, k:k + width] for k in range(K)], axis=0)
        return jnp.dot(w_ref[...], a, preferred_element_type=jnp.float32) + b_ref[...]

    def valid_mask(g_start, width):
        # 1.0 where the global column is inside the real sequence [0, seq_len).
        col = g_start + jax.lax.broadcasted_iota(jnp.int32, (1, width), 1)
        return jnp.logical_and(col >= 0, col < seq_len).astype(jnp.float32)

    # --- fused shortcut(1x1) + conv3x3: ONE stacked matmul over the W3 window ---
    y = conv_mm(xwin, wstack_ref, bstack_ref, W3)              # (8F, W3) f32
    sc = y[:C7, 2 * PAD:2 * PAD + TL]                          # (7F, TL) pre-BN shortcut
    # zero c3/c5 outside the real sequence so the next conv's 'same' padding is exact
    c3 = jnp.maximum(y[C7:, :], 0.0) * valid_mask(t0 - 2 * PAD, W3)       # (F,  W3)
    c5 = jnp.maximum(conv_mm(c3.astype(mdt), w5_ref, b5_ref, W5), 0.0)
    c5 = c5 * valid_mask(t0 - PAD, W5)                                    # (2F, W5)
    c7 = jnp.maximum(conv_mm(c5.astype(mdt), w7_ref, b7_ref, TL), 0.0)    # (4F, TL)

    c3c = c3[:, 2 * PAD:2 * PAD + TL]                          # central TL columns
    c5c = c5[:, PAD:PAD + TL]

    # store branch outputs directly into sublane sub-ranges (no (7F, L) concat temp)
    sc_ref[0] = sc.astype(sc_ref.dtype)
    cat_ref[0, :F, :] = c3c.astype(cat_ref.dtype)
    cat_ref[0, F:3 * F, :] = c5c.astype(cat_ref.dtype)
    cat_ref[0, 3 * F:, :] = c7.astype(cat_ref.dtype)

    # single-pass BN statistics for this tile, masked to real columns only
    mo = valid_mask(t0, TL)

    def sums(v):
        vm = v * mo
        return (jnp.sum(vm, axis=-1, keepdims=True),
                jnp.sum(vm * vm, axis=-1, keepdims=True))

    s_sc, q_sc = sums(sc)
    s3, q3 = sums(c3c)
    s5, q5 = sums(c5c)
    s7, q7 = sums(c7)
    stats_ref[0] = jnp.concatenate(
        [s_sc, q_sc,
         jnp.concatenate([s3, s5, s7], axis=0),
         jnp.concatenate([q3, q5, q7], axis=0)], axis=-1)      # (7F, 4)


# ---------------------------------------------------------------------------
# Phase 2: per-channel scale/shift (folded BN) + residual + relu.  HBM-bound.
# ---------------------------------------------------------------------------
def _fuse_kernel(sc_ref, cat_ref, ssc_ref, tsc_ref, scat_ref, tcat_ref, out_ref):
    shortcut = jnp.maximum(
        sc_ref[0].astype(jnp.float32) * ssc_ref[...] + tsc_ref[...], 0.0)
    out_ref[0] = jnp.maximum(
        cat_ref[0].astype(jnp.float32) * scat_ref[...] + tcat_ref[...] + shortcut, 0.0)


# ---------------------------------------------------------------------------
# Wrapper
# ---------------------------------------------------------------------------
def multires_block(x, params, n_filters, *, mxu_dtype=jnp.bfloat16,
                   store_dtype=jnp.bfloat16, tile_l=512):
    """x: (N, C_in, L) float32 -> (N, 7*n_filters, L) float32 (PyTorch layout)."""
    f32 = jnp.float32
    n, c_in, length = x.shape
    F = n_filters
    c7 = 7 * F
    c8 = c7 + F

    # L tiling: lane-dense tiles (multiple of 128), padded real length lp.
    TL = _round_up(min(tile_l, _round_up(length, LANE)), LANE)
    lp = _round_up(length, TL)
    nt = lp // TL
    c_in_p = _round_up(c_in, 8)               # aligned im2col tap blocks
    x_len = lp + 2 * HALO

    # pre-pad: channels to c_in_p, length by the conv-chain halo + tile padding.
    x_pad = jnp.pad(x.astype(f32),
                    ((0, 0), (0, c_in_p - c_in), (HALO, HALO + lp - length)))

    # --- weights: flatten to (C_out, K*C_in) with row = k*C_in + c (im2col order).
    # Stack the 1x1 shortcut into the center-tap (k=PAD) columns of the c3 weight.
    wstack = jnp.zeros((c8, K, c_in_p), f32)
    wstack = wstack.at[:c7, PAD, :c_in].set(params["w_sc"][:, :, 0].astype(f32))
    wstack = wstack.at[c7:, :, :c_in].set(
        jnp.transpose(params["w3"].astype(f32), (0, 2, 1)))
    wstack = wstack.reshape(c8, K * c_in_p).astype(mxu_dtype)
    bstack = jnp.concatenate([params["b_sc"], params["b3"]]).reshape(c8, 1).astype(f32)

    w5f = jnp.transpose(params["w5"], (0, 2, 1)).reshape(2 * F, K * F).astype(mxu_dtype)
    w7f = jnp.transpose(params["w7"], (0, 2, 1)).reshape(4 * F, K * 2 * F).astype(mxu_dtype)
    b5 = params["b5"].reshape(-1, 1).astype(f32)
    b7 = params["b7"].reshape(-1, 1).astype(f32)

    vmem = pl.BlockSpec(memory_space=pltpu.MemorySpace.VMEM)
    x_spec = pl.BlockSpec((1, c_in_p, x_len), lambda b, l: (b, 0, 0))
    tile_spec = pl.BlockSpec((1, c7, TL), lambda b, l: (b, 0, l))
    stats_spec = pl.BlockSpec((1, c7, 4), lambda b, l: (b * nt + l, 0, 0))
    cparams = pltpu.CompilerParams(
        dimension_semantics=("parallel", "parallel"),
        vmem_limit_bytes=64 * 1024 * 1024)

    kernel1 = functools.partial(_branch_kernel, n_filters=F,
                                seq_len=length, tile_l=TL)
    sc_pre, cat_pre, stats = pl.pallas_call(
        kernel1,
        out_shape=(jax.ShapeDtypeStruct((n, c7, lp), store_dtype),
                   jax.ShapeDtypeStruct((n, c7, lp), store_dtype),
                   jax.ShapeDtypeStruct((n * nt, c7, 4), f32)),
        grid=(n, nt),
        in_specs=[x_spec] + [vmem] * 6,
        out_specs=(tile_spec, tile_spec, stats_spec),
        compiler_params=cparams,
    )(x_pad, wstack, bstack, w5f, b5, w7f, b7)

    # --- tiny JAX glue: reduce partial stats, fold BN into per-channel scale/shift
    count = jnp.float32(n * length)
    tot = jnp.sum(stats, axis=0)                        # (7F, 4)
    mu_sc, ex2_sc, mu_cat, ex2_cat = (tot[:, i] / count for i in range(4))
    var_sc = jnp.maximum(ex2_sc - mu_sc * mu_sc, 0.0)   # clamp f32 cancellation
    var_cat = jnp.maximum(ex2_cat - mu_cat * mu_cat, 0.0)
    gamma = params["gamma"].astype(f32)
    beta = params["beta"].astype(f32)
    scale_sc = gamma * jax.lax.rsqrt(var_sc + EPS)
    shift_sc = beta - mu_sc * scale_sc
    scale_cat = gamma * jax.lax.rsqrt(var_cat + EPS)
    shift_cat = beta - mu_cat * scale_cat

    out = pl.pallas_call(
        _fuse_kernel,
        out_shape=jax.ShapeDtypeStruct((n, c7, lp), f32),
        grid=(n, nt),
        in_specs=[tile_spec, tile_spec] + [vmem] * 4,
        out_specs=tile_spec,
        compiler_params=cparams,
    )(sc_pre, cat_pre,
      scale_sc.reshape(c7, 1), shift_sc.reshape(c7, 1),
      scale_cat.reshape(c7, 1), shift_cat.reshape(c7, 1))
    return out[:, :, :length]


# ---------------------------------------------------------------------------
# Pure-JAX f32 reference (mirrors the PyTorch module's forward exactly;
# training-mode BN: batch stats per application, shared gamma/beta).
# ---------------------------------------------------------------------------
def reference(x, params):
    n, c_in, length = x.shape

    def conv1d_same(inp, w, b):
        k = w.shape[-1]
        pad = (k - 1) // 2
        xp = jnp.pad(inp, ((0, 0), (0, 0), (pad, pad)))
        y = sum(jnp.einsum("ncl,oc->nol", xp[:, :, t:t + length], w[:, :, t])
                for t in range(k))
        return y + b[None, :, None]

    def bn(y):
        mu = jnp.mean(y, axis=(0, 2), keepdims=True)
        var = jnp.mean((y - mu) ** 2, axis=(0, 2), keepdims=True)
        return (params["gamma"][None, :, None] * (y - mu)
                * jax.lax.rsqrt(var + EPS) + params["beta"][None, :, None])

    shortcut = jax.nn.relu(bn(conv1d_same(x, params["w_sc"], params["b_sc"])))
    c3 = jax.nn.relu(conv1d_same(x, params["w3"], params["b3"]))
    c5 = jax.nn.relu(conv1d_same(c3, params["w5"], params["b5"]))
    c7 = jax.nn.relu(conv1d_same(c5, params["w7"], params["b7"]))
    cat = jnp.concatenate([c3, c5, c7], axis=1)
    return jax.nn.relu(bn(cat) + shortcut)


def init_params(key, in_channels, n_filters):
    c7 = 7 * n_filters
    ks = jax.random.split(key, 10)

    def conv_w(k, c_out, c_in, ksize):
        fan_in = c_in * ksize
        return jax.random.normal(k, (c_out, c_in, ksize), jnp.float32) / jnp.sqrt(fan_in)

    return {
        "w_sc": conv_w(ks[0], c7, in_channels, 1),
        "b_sc": 0.05 * jax.random.normal(ks[1], (c7,), jnp.float32),
        "w3": conv_w(ks[2], n_filters, in_channels, K),
        "b3": 0.05 * jax.random.normal(ks[3], (n_filters,), jnp.float32),
        "w5": conv_w(ks[4], 2 * n_filters, n_filters, K),
        "b5": 0.05 * jax.random.normal(ks[5], (2 * n_filters,), jnp.float32),
        "w7": conv_w(ks[6], 4 * n_filters, 2 * n_filters, K),
        "b7": 0.05 * jax.random.normal(ks[7], (4 * n_filters,), jnp.float32),
        "gamma": 1.0 + 0.1 * jax.random.normal(ks[8], (c7,), jnp.float32),
        "beta": 0.1 * jax.random.normal(ks[9], (c7,), jnp.float32),
    }


if __name__ == "__main__":
    key = jax.random.PRNGKey(0)
    k_x, k_p = jax.random.split(key)

    N, C_IN, L, N_FILTERS = 2, 4, 16, 4          # output channels = 28
    x = jax.random.normal(k_x, (N, C_IN, L), jnp.float32)
    params = init_params(k_p, C_IN, N_FILTERS)

    ref = jax.block_until_ready(reference(x, params))

    # Exact-semantics check: f32 MXU + f32 intermediates vs f32 reference.
    run_f32 = jax.jit(functools.partial(multires_block, n_filters=N_FILTERS,
                                        mxu_dtype=jnp.float32,
                                        store_dtype=jnp.float32))
    out = jax.block_until_ready(run_f32(x, params))
    assert out.shape == (N, 7 * N_FILTERS, L), out.shape
    err = float(jnp.max(jnp.abs(out - ref)))
    assert jnp.allclose(out, ref, atol=2e-3, rtol=2e-3), err

    # Fast path (default): bf16 MXU inputs + bf16 intermediates, f32 accumulation
    # and f32 BN/elementwise.  Tolerance reflects bf16 rounding across three
    # chained convs + bf16 intermediate storage.
    run_fast = jax.jit(functools.partial(multires_block, n_filters=N_FILTERS))
    out_fast = jax.block_until_ready(run_fast(x, params))
    err_fast = float(jnp.max(jnp.abs(out_fast - ref)))
    assert jnp.allclose(out_fast, ref, atol=1e-1, rtol=1e-1), err_fast

    print("KERNEL_OK")
</pallas_src>

<mosaic_0001>
module attributes {stable_mosaic.version = 11 : i64} {
  func.func @_branch_kernel(%arg0: i32, %arg1: i32, %arg2: memref<1x8x170xf32, #tpu.memory_space<vmem>>, %arg3: memref<32x120xf32, #tpu.memory_space<vmem>>, %arg4: memref<32x1xf32, #tpu.memory_space<vmem>>, %arg5: memref<8x60xf32, #tpu.memory_space<vmem>>, %arg6: memref<8x1xf32, #tpu.memory_space<vmem>>, %arg7: memref<16x120xf32, #tpu.memory_space<vmem>>, %arg8: memref<16x1xf32, #tpu.memory_space<vmem>>, %arg9: memref<1x28x128xf32, #tpu.memory_space<vmem>>, %arg10: memref<1x28x128xf32, #tpu.memory_space<vmem>>, %arg11: memref<1x28x4xf32, #tpu.memory_space<vmem>>) attributes {dimension_semantics = [#tpu.dimension_semantics<parallel>, #tpu.dimension_semantics<parallel>], iteration_bounds = array<i64: 2, 1>, scalar_prefetch = 0 : i64, scratch_operands = 0 : i64, tpu.core_type = #tpu.core_type<tc>, window_params = [{transform_indices = @transform_0, window_bounds = array<i64: 1, 8, 170>}, {pipeline_mode = #tpu.pipeline_mode<synchronous>, transform_indices = @transform_1, window_bounds = array<i64: 32, 120>}, {pipeline_mode = #tpu.pipeline_mode<synchronous>, transform_indices = @transform_2, window_bounds = array<i64: 32, 1>}, {pipeline_mode = #tpu.pipeline_mode<synchronous>, transform_indices = @transform_3, window_bounds = array<i64: 8, 60>}, {pipeline_mode = #tpu.pipeline_mode<synchronous>, transform_indices = @transform_4, window_bounds = array<i64: 8, 1>}, {pipeline_mode = #tpu.pipeline_mode<synchronous>, transform_indices = @transform_5, window_bounds = array<i64: 16, 120>}, {pipeline_mode = #tpu.pipeline_mode<synchronous>, transform_indices = @transform_6, window_bounds = array<i64: 16, 1>}, {transform_indices = @transform_7, window_bounds = array<i64: 1, 28, 128>}, {transform_indices = @transform_8, window_bounds = array<i64: 1, 28, 128>}, {transform_indices = @transform_9, window_bounds = array<i64: 1, 28, 4>}]} {
    %c128_i32 = arith.constant 128 : i32
    %0 = arith.muli %arg1, %c128_i32 : i32
    %1 = tpu.assume_multiple %0, 128 : i32
    %c0 = arith.constant 0 : index
    %c0_0 = arith.constant 0 : index
    %2 = arith.index_cast %1 : i32 to index
    %3 = vector.load %arg2[%c0, %c0_0, %2] : memref<1x8x170xf32, #tpu.memory_space<vmem>>, vector<1x8x170xf32>
    %4 = vector.shape_cast %3 : vector<1x8x170xf32> to vector<8x170xf32>
    %5 = vector.extract_strided_slice %4 {offsets = [0, 0], sizes = [8, 156], strides = [1, 1]} : vector<8x170xf32> to vector<8x156xf32>
    %6 = vector.extract_strided_slice %4 {offsets = [0, 1], sizes = [8, 156], strides = [1, 1]} : vector<8x170xf32> to vector<8x156xf32>
    %7 = vector.extract_strided_slice %4 {offsets = [0, 2], sizes = [8, 156], strides = [1, 1]} : vector<8x170xf32> to vector<8x156xf32>
    %8 = vector.extract_strided_slice %4 {offsets = [0, 3], sizes = [8, 156], strides = [1, 1]} : vector<8x170xf32> to vector<8x156xf32>
    %9 = vector.extract_strided_slice %4 {offsets = [0, 4], sizes = [8, 156], strides = [1, 1]} : vector<8x170xf32> to vector<8x156xf32>
    %10 = vector.extract_strided_slice %4 {offsets = [0, 5], sizes = [8, 156], strides = [1, 1]} : vector<8x170xf32> to vector<8x156xf32>
    %11 = vector.extract_strided_slice %4 {offsets = [0, 6], sizes = [8, 156], strides = [1, 1]} : vector<8x170xf32> to vector<8x156xf32>
    %12 = vector.extract_strided_slice %4 {offsets = [0, 7], sizes = [8, 156], strides = [1, 1]} : vector<8x170xf32> to vector<8x156xf32>
    %13 = vector.extract_strided_slice %4 {offsets = [0, 8], sizes = [8, 156], strides = [1, 1]} : vector<8x170xf32> to vector<8x156xf32>
    %14 = vector.extract_strided_slice %4 {offsets = [0, 9], sizes = [8, 156], strides = [1, 1]} : vector<8x170xf32> to vector<8x156xf32>
    %15 = vector.extract_strided_slice %4 {offsets = [0, 10], sizes = [8, 156], strides = [1, 1]} : vector<8x170xf32> to vector<8x156xf32>
    %16 = vector.extract_strided_slice %4 {offsets = [0, 11], sizes = [8, 156], strides = [1, 1]} : vector<8x170xf32> to vector<8x156xf32>
    %17 = vector.extract_strided_slice %4 {offsets = [0, 12], sizes = [8, 156], strides = [1, 1]} : vector<8x170xf32> to vector<8x156xf32>
    %18 = vector.extract_strided_slice %4 {offsets = [0, 13], sizes = [8, 156], strides = [1, 1]} : vector<8x170xf32> to vector<8x156xf32>
    %19 = vector.extract_strided_slice %4 {offsets = [0, 14], sizes = [8, 156], strides = [1, 1]} : vector<8x170xf32> to vector<8x156xf32>
    %20 = tpu.concatenate %5, %6, %7, %8, %9, %10, %11, %12, %13, %14, %15, %16, %17, %18, %19 in 0 : vector<8x156xf32>, vector<8x156xf32>, vector<8x156xf32>, vector<8x156xf32>, vector<8x156xf32>, vector<8x156xf32>, vector<8x156xf32>, vector<8x156xf32>, vector<8x156xf32>, vector<8x156xf32>, vector<8x156xf32>, vector<8x156xf32>, vector<8x156xf32>, vector<8x156xf32>, vector<8x156xf32> -> vector<120x156xf32>
    %c0_1 = arith.constant 0 : index
    %c0_2 = arith.constant 0 : index
    %21 = vector.load %arg3[%c0_1, %c0_2] : memref<32x120xf32, #tpu.memory_space<vmem>>, vector<32x120xf32>
    %cst = arith.constant dense<0.000000e+00> : vector<32x156xf32>
    %22 = tpu.matmul %21, %20, %cst {dimension_numbers = #tpu.dot_dimension_numbers<[1], [0], [0], [1], [0, 0, 1, 1], [], []>} : vector<32x120xf32>, vector<120x156xf32>, vector<32x156xf32> -> vector<32x156xf32>
    %c0_3 = arith.constant 0 : index
    %c0_4 = arith.constant 0 : index
    %23 = vector.load %arg4[%c0_3, %c0_4] : memref<32x1xf32, #tpu.memory_space<vmem>>, vector<32x1xf32>
    %24 = vector.broadcast %23 : vector<32x1xf32> to vector<32x156xf32>
    %25 = arith.addf %22, %24 : vector<32x156xf32>
    %26 = vector.extract_strided_slice %25 {offsets = [0, 14], sizes = [28, 128], strides = [1, 1]} : vector<32x156xf32> to vector<28x128xf32>
    %27 = vector.extract_strided_slice %25 {offsets = [28, 0], sizes = [4, 156], strides = [1, 1]} : vector<32x156xf32> to vector<4x156xf32>
    %cst_5 = arith.constant 0.000000e+00 : f32
    %28 = vector.broadcast %cst_5 : f32 to vector<4x156xf32>
    %29 = arith.maximumf %27, %28 : vector<4x156xf32>
    %c14_i32 = arith.constant 14 : i32
    %30 = arith.subi %0, %c14_i32 : i32
    %31 = tpu.iota {dimensions = array<i32: 1>} : vector<1x156xi32>
    %32 = vector.broadcast %30 : i32 to vector<1x156xi32>
    %33 = arith.addi %32, %31 : vector<1x156xi32>
    %c0_i32 = arith.constant 0 : i32
    %34 = vector.broadcast %c0_i32 : i32 to vector<1x156xi32>
    %35 = arith.cmpi sge, %33, %34 : vector<1x156xi32>
    %c16_i32 = arith.constant 16 : i32
    %36 = vector.broadcast %c16_i32 : i32 to vector<1x156xi32>
    %37 = arith.cmpi slt, %33, %36 : vector<1x156xi32>
    %38 = arith.andi %35, %37 : vector<1x156xi1>
    %39 = arith.extui %38 : vector<1x156xi1> to vector<1x156xi32>
    %40 = arith.sitofp %39 : vector<1x156xi32> to vector<1x156xf32>
    %41 = vector.broadcast %40 : vector<1x156xf32> to vector<4x156xf32>
    %42 = arith.mulf %29, %41 : vector<4x156xf32>
    %43 = vector.extract_strided_slice %42 {offsets = [0, 0], sizes = [4, 142], strides = [1, 1]} : vector<4x156xf32> to vector<4x142xf32>
    %44 = vector.extract_strided_slice %42 {offsets = [0, 1], sizes = [4, 142], strides = [1, 1]} : vector<4x156xf32> to vector<4x142xf32>
    %45 = vector.extract_strided_slice %42 {offsets = [0, 2], sizes = [4, 142], strides = [1, 1]} : vector<4x156xf32> to vector<4x142xf32>
    %46 = vector.extract_strided_slice %42 {offsets = [0, 3], sizes = [4, 142], strides = [1, 1]} : vector<4x156xf32> to vector<4x142xf32>
    %47 = vector.extract_strided_slice %42 {offsets = [0, 4], sizes = [4, 142], strides = [1, 1]} : vector<4x156xf32> to vector<4x142xf32>
    %48 = vector.extract_strided_slice %42 {offsets = [0, 5], sizes = [4, 142], strides = [1, 1]} : vector<4x156xf32> to vector<4x142xf32>
    %49 = vector.extract_strided_slice %42 {offsets = [0, 6], sizes = [4, 142], strides = [1, 1]} : vector<4x156xf32> to vector<4x142xf32>
    %50 = vector.extract_strided_slice %42 {offsets = [0, 7], sizes = [4, 142], strides = [1, 1]} : vector<4x156xf32> to vector<4x142xf32>
    %51 = vector.extract_strided_slice %42 {offsets = [0, 8], sizes = [4, 142], strides = [1, 1]} : vector<4x156xf32> to vector<4x142xf32>
    %52 = vector.extract_strided_slice %42 {offsets = [0, 9], sizes = [4, 142], strides = [1, 1]} : vector<4x156xf32> to vector<4x142xf32>
    %53 = vector.extract_strided_slice %42 {offsets = [0, 10], sizes = [4, 142], strides = [1, 1]} : vector<4x156xf32> to vector<4x142xf32>
    %54 = vector.extract_strided_slice %42 {offsets = [0, 11], sizes = [4, 142], strides = [1, 1]} : vector<4x156xf32> to vector<4x142xf32>
    %55 = vector.extract_strided_slice %42 {offsets = [0, 12], sizes = [4, 142], strides = [1, 1]} : vector<4x156xf32> to vector<4x142xf32>
    %56 = vector.extract_strided_slice %42 {offsets = [0, 13], sizes = [4, 142], strides = [1, 1]} : vector<4x156xf32> to vector<4x142xf32>
    %57 = vector.extract_strided_slice %42 {offsets = [0, 14], sizes = [4, 142], strides = [1, 1]} : vector<4x156xf32> to vector<4x142xf32>
    %58 = tpu.concatenate %43, %44, %45, %46, %47, %48, %49, %50, %51, %52, %53, %54, %55, %56, %57 in 0 : vector<4x142xf32>, vector<4x142xf32>, vector<4x142xf32>, vector<4x142xf32>, vector<4x142xf32>, vector<4x142xf32>, vector<4x142xf32>, vector<4x142xf32>, vector<4x142xf32>, vector<4x142xf32>, vector<4x142xf32>, vector<4x142xf32>, vector<4x142xf32>, vector<4x142xf32>, vector<4x142xf32> -> vector<60x142xf32>
    %c0_6 = arith.constant 0 : index
    %c0_7 = arith.constant 0 : index
    %59 = vector.load %arg5[%c0_6, %c0_7] : memref<8x60xf32, #tpu.memory_space<vmem>>, vector<8x60xf32>
    %cst_8 = arith.constant dense<0.000000e+00> : vector<8x142xf32>
    %60 = tpu.matmul %59, %58, %cst_8 {dimension_numbers = #tpu.dot_dimension_numbers<[1], [0], [0], [1], [0, 0, 1, 1], [], []>} : vector<8x60xf32>, vector<60x142xf32>, vector<8x142xf32> -> vector<8x142xf32>
    %c0_9 = arith.constant 0 : index
    %c0_10 = arith.constant 0 : index
    %61 = vector.load %arg6[%c0_9, %c0_10] : memref<8x1xf32, #tpu.memory_space<vmem>>, vector<8x1xf32>
    %62 = vector.broadcast %61 : vector<8x1xf32> to vector<8x142xf32>
    %63 = arith.addf %60, %62 : vector<8x142xf32>
    %cst_11 = arith.constant 0.000000e+00 : f32
    %64 = vector.broadcast %cst_11 : f32 to vector<8x142xf32>
    %65 = arith.maximumf %63, %64 : vector<8x142xf32>
    %c7_i32 = arith.constant 7 : i32
    %66 = arith.subi %0, %c7_i32 : i32
    %67 = tpu.iota {dimensions = array<i32: 1>} : vector<1x142xi32>
    %68 = vector.broadcast %66 : i32 to vector<1x142xi32>
    %69 = arith.addi %68, %67 : vector<1x142xi32>
    %c0_i32_12 = arith.constant 0 : i32
    %70 = vector.broadcast %c0_i32_12 : i32 to vector<1x142xi32>
    %71 = arith.cmpi sge, %69, %70 : vector<1x142xi32>
    %c16_i32_13 = arith.constant 16 : i32
    %72 = vector.broadcast %c16_i32_13 : i32 to vector<1x142xi32>
    %73 = arith.cmpi slt, %69, %72 : vector<1x142xi32>
    %74 = arith.andi %71, %73 : vector<1x142xi1>
    %75 = arith.extui %74 : vector<1x142xi1> to vector<1x142xi32>
    %76 = arith.sitofp %75 : vector<1x142xi32> to vector<1x142xf32>
    %77 = vector.broadcast %76 : vector<1x142xf32> to vector<8x142xf32>
    %78 = arith.mulf %65, %77 : vector<8x142xf32>
    %79 = vector.extract_strided_slice %78 {offsets = [0, 0], sizes = [8, 128], strides = [1, 1]} : vector<8x142xf32> to vector<8x128xf32>
    %80 = vector.extract_strided_slice %78 {offsets = [0, 1], sizes = [8, 128], strides = [1, 1]} : vector<8x142xf32> to vector<8x128xf32>
    %81 = vector.extract_strided_slice %78 {offsets = [0, 2], sizes = [8, 128], strides = [1, 1]} : vector<8x142xf32> to vector<8x128xf32>
    %82 = vector.extract_strided_slice %78 {offsets = [0, 3], sizes = [8, 128], strides = [1, 1]} : vector<8x142xf32> to vector<8x128xf32>
    %83 = vector.extract_strided_slice %78 {offsets = [0, 4], sizes = [8, 128], strides = [1, 1]} : vector<8x142xf32> to vector<8x128xf32>
    %84 = vector.extract_strided_slice %78 {offsets = [0, 5], sizes = [8, 128], strides = [1, 1]} : vector<8x142xf32> to vector<8x128xf32>
    %85 = vector.extract_strided_slice %78 {offsets = [0, 6], sizes = [8, 128], strides = [1, 1]} : vector<8x142xf32> to vector<8x128xf32>
    %86 = vector.extract_strided_slice %78 {offsets = [0, 7], sizes = [8, 128], strides = [1, 1]} : vector<8x142xf32> to vector<8x128xf32>
    %87 = vector.extract_strided_slice %78 {offsets = [0, 8], sizes = [8, 128], strides = [1, 1]} : vector<8x142xf32> to vector<8x128xf32>
    %88 = vector.extract_strided_slice %78 {offsets = [0, 9], sizes = [8, 128], strides = [1, 1]} : vector<8x142xf32> to vector<8x128xf32>
    %89 = vector.extract_strided_slice %78 {offsets = [0, 10], sizes = [8, 128], strides = [1, 1]} : vector<8x142xf32> to vector<8x128xf32>
    %90 = vector.extract_strided_slice %78 {offsets = [0, 11], sizes = [8, 128], strides = [1, 1]} : vector<8x142xf32> to vector<8x128xf32>
    %91 = vector.extract_strided_slice %78 {offsets = [0, 12], sizes = [8, 128], strides = [1, 1]} : vector<8x142xf32> to vector<8x128xf32>
    %92 = vector.extract_strided_slice %78 {offsets = [0, 13], sizes = [8, 128], strides = [1, 1]} : vector<8x142xf32> to vector<8x128xf32>
    %93 = vector.extract_strided_slice %78 {offsets = [0, 14], sizes = [8, 128], strides = [1, 1]} : vector<8x142xf32> to vector<8x128xf32>
    %94 = tpu.concatenate %79, %80, %81, %82, %83, %84, %85, %86, %87, %88, %89, %90, %91, %92, %93 in 0 : vector<8x128xf32>, vector<8x128xf32>, vector<8x128xf32>, vector<8x128xf32>, vector<8x128xf32>, vector<8x128xf32>, vector<8x128xf32>, vector<8x128xf32>, vector<8x128xf32>, vector<8x128xf32>, vector<8x128xf32>, vector<8x128xf32>, vector<8x128xf32>, vector<8x128xf32>, vector<8x128xf32> -> vector<120x128xf32>
    %c0_14 = arith.constant 0 : index
    %c0_15 = arith.constant 0 : index
    %95 = vector.load %arg7[%c0_14, %c0_15] : memref<16x120xf32, #tpu.memory_space<vmem>>, vector<16x120xf32>
    %cst_16 = arith.constant dense<0.000000e+00> : vector<16x128xf32>
    %96 = tpu.matmul %95, %94, %cst_16 {dimension_numbers = #tpu.dot_dimension_numbers<[1], [0], [0], [1], [0, 0, 1, 1], [], []>} : vector<16x120xf32>, vector<120x128xf32>, vector<16x128xf32> -> vector<16x128xf32>
    %c0_17 = arith.constant 0 : index
    %c0_18 = arith.constant 0 : index
    %97 = vector.load %arg8[%c0_17, %c0_18] : memref<16x1xf32, #tpu.memory_space<vmem>>, vector<16x1xf32>
    %98 = vector.broadcast %97 : vector<16x1xf32> to vector<16x128xf32>
    %99 = arith.addf %96, %98 : vector<16x128xf32>
    %cst_19 = arith.constant 0.000000e+00 : f32
    %100 = vector.broadcast %cst_19 : f32 to vector<16x128xf32>
    %101 = arith.maximumf %99, %100 : vector<16x128xf32>
    %102 = vector.extract_strided_slice %42 {offsets = [0, 14], sizes = [4, 128], strides = [1, 1]} : vector<4x156xf32> to vector<4x128xf32>
    %103 = vector.extract_strided_slice %78 {offsets = [0, 7], sizes = [8, 128], strides = [1, 1]} : vector<8x142xf32> to vector<8x128xf32>
    %c0_20 = arith.constant 0 : index
    %c0_21 = arith.constant 0 : index
    %c0_22 = arith.constant 0 : index
    %104 = vector.load %arg9[%c0_20, %c0_21, %c0_22] : memref<1x28x128xf32, #tpu.memory_space<vmem>>, vector<1x28x128xf32>
    %105 = vector.shape_cast %104 : vector<1x28x128xf32> to vector<28x128xf32>
    %106 = vector.shape_cast %26 : vector<28x128xf32> to vector<1x28x128xf32>
    tpu.vector_store %arg9[%c0_20, %c0_21, %c0_22], %106 {strides = array<i32>} : memref<1x28x128xf32, #tpu.memory_space<vmem>>, vector<1x28x128xf32>,
    %c0_23 = arith.constant 0 : index
    %c0_24 = arith.constant 0 : index
    %c0_25 = arith.constant 0 : index
    %107 = vector.load %arg10[%c0_23, %c0_24, %c0_25] : memref<1x28x128xf32, #tpu.memory_space<vmem>>, vector<1x4x128xf32>
    %108 = vector.shape_cast %107 : vector<1x4x128xf32> to vector<4x128xf32>
    %109 = vector.shape_cast %102 : vector<4x128xf32> to vector<1x4x128xf32>
    tpu.vector_store %arg10[%c0_23, %c0_24, %c0_25], %109 {strides = array<i32>} : memref<1x28x128xf32, #tpu.memory_space<vmem>>, vector<1x4x128xf32>,
    %c0_26 = arith.constant 0 : index
    %c4 = arith.constant 4 : index
    %c0_27 = arith.constant 0 : index
    %110 = vector.load %arg10[%c0_26, %c4, %c0_27] : memref<1x28x128xf32, #tpu.memory_space<vmem>>, vector<1x8x128xf32>
    %111 = vector.shape_cast %110 : vector<1x8x128xf32> to vector<8x128xf32>
    %112 = vector.shape_cast %103 : vector<8x128xf32> to vector<1x8x128xf32>
    tpu.vector_store %arg10[%c0_26, %c4, %c0_27], %112 {strides = array<i32>} : memref<1x28x128xf32, #tpu.memory_space<vmem>>, vector<1x8x128xf32>,
    %c0_28 = arith.constant 0 : index
    %c12 = arith.constant 12 : index
    %c0_29 = arith.constant 0 : index
    %113 = vector.load %arg10[%c0_28, %c12, %c0_29] : memref<1x28x128xf32, #tpu.memory_space<vmem>>, vector<1x16x128xf32>
    %114 = vector.shape_cast %113 : vector<1x16x128xf32> to vector<16x128xf32>
    %115 = vector.shape_cast %101 : vector<16x128xf32> to vector<1x16x128xf32>
    tpu.vector_store %arg10[%c0_28, %c12, %c0_29], %115 {strides = array<i32>} : memref<1x28x128xf32, #tpu.memory_space<vmem>>, vector<1x16x128xf32>,
    %116 = tpu.iota {dimensions = array<i32: 1>} : vector<1x128xi32>
    %117 = vector.broadcast %0 : i32 to vector<1x128xi32>
    %118 = arith.addi %117, %116 : vector<1x128xi32>
    %c0_i32_30 = arith.constant 0 : i32
    %119 = vector.broadcast %c0_i32_30 : i32 to vector<1x128xi32>
    %120 = arith.cmpi sge, %118, %119 : vector<1x128xi32>
    %c16_i32_31 = arith.constant 16 : i32
    %121 = vector.broadcast %c16_i32_31 : i32 to vector<1x128xi32>
    %122 = arith.cmpi slt, %118, %121 : vector<1x128xi32>
    %123 = arith.andi %120, %122 : vector<1x128xi1>
    %124 = arith.extui %123 : vector<1x128xi1> to vector<1x128xi32>
    %125 = arith.sitofp %124 : vector<1x128xi32> to vector<1x128xf32>
    %126 = vector.broadcast %125 : vector<1x128xf32> to vector<28x128xf32>
    %127 = arith.mulf %26, %126 : vector<28x128xf32>
    %cst_32 = arith.constant dense<0.000000e+00> : vector<28xf32>
    %128 = vector.multi_reduction <add>, %127, %cst_32 [1] : vector<28x128xf32> to vector<28xf32>
    %129 = vector.shape_cast %128 : vector<28xf32> to vector<28x1xf32>
    %130 = arith.mulf %127, %127 : vector<28x128xf32>
    %cst_33 = arith.constant dense<0.000000e+00> : vector<28xf32>
    %131 = vector.multi_reduction <add>, %130, %cst_33 [1] : vector<28x128xf32> to vector<28xf32>
    %132 = vector.shape_cast %131 : vector<28xf32> to vector<28x1xf32>
    %133 = vector.broadcast %125 : vector<1x128xf32> to vector<4x128xf32>
    %134 = arith.mulf %102, %133 : vector<4x128xf32>
    %cst_34 = arith.constant dense<0.000000e+00> : vector<4xf32>
    %135 = vector.multi_reduction <add>, %134, %cst_34 [1] : vector<4x128xf32> to vector<4xf32>
    %136 = vector.shape_cast %135 : vector<4xf32> to vector<4x1xf32>
    %137 = arith.mulf %134, %134 : vector<4x128xf32>
    %cst_35 = arith.constant dense<0.000000e+00> : vector<4xf32>
    %138 = vector.multi_reduction <add>, %137, %cst_35 [1] : vector<4x128xf32> to vector<4xf32>
    %139 = vector.shape_cast %138 : vector<4xf32> to vector<4x1xf32>
    %140 = vector.broadcast %125 : vector<1x128xf32> to vector<8x128xf32>
    %141 = arith.mulf %103, %140 : vector<8x128xf32>
    %cst_36 = arith.constant dense<0.000000e+00> : vector<8xf32>
    %142 = vector.multi_reduction <add>, %141, %cst_36 [1] : vector<8x128xf32> to vector<8xf32>
    %143 = vector.shape_cast %142 : vector<8xf32> to vector<8x1xf32>
    %144 = arith.mulf %141, %141 : vector<8x128xf32>
    %cst_37 = arith.constant dense<0.000000e+00> : vector<8xf32>
    %145 = vector.multi_reduction <add>, %144, %cst_37 [1] : vector<8x128xf32> to vector<8xf32>
    %146 = vector.shape_cast %145 : vector<8xf32> to vector<8x1xf32>
    %147 = vector.broadcast %125 : vector<1x128xf32> to vector<16x128xf32>
    %148 = arith.mulf %101, %147 : vector<16x128xf32>
    %cst_38 = arith.constant dense<0.000000e+00> : vector<16xf32>
    %149 = vector.multi_reduction <add>, %148, %cst_38 [1] : vector<16x128xf32> to vector<16xf32>
    %150 = vector.shape_cast %149 : vector<16xf32> to vector<16x1xf32>
    %151 = arith.mulf %148, %148 : vector<16x128xf32>
    %cst_39 = arith.constant dense<0.000000e+00> : vector<16xf32>
    %152 = vector.multi_reduction <add>, %151, %cst_39 [1] : vector<16x128xf32> to vector<16xf32>
    %153 = vector.shape_cast %152 : vector<16xf32> to vector<16x1xf32>
    %154 = tpu.concatenate %136, %143, %150 in 0 : vector<4x1xf32>, vector<8x1xf32>, vector<16x1xf32> -> vector<28x1xf32>
    %155 = tpu.concatenate %139, %146, %153 in 0 : vector<4x1xf32>, vector<8x1xf32>, vector<16x1xf32> -> vector<28x1xf32>
    %156 = tpu.concatenate %129, %132, %154, %155 in 1 : vector<28x1xf32>, vector<28x1xf32>, vector<28x1xf32>, vector<28x1xf32> -> vector<28x4xf32>
    %c0_40 = arith.constant 0 : index
    %c0_41 = arith.constant 0 : index
    %c0_42 = arith.constant 0 : index
    %157 = vector.load %arg11[%c0_40, %c0_41, %c0_42] : memref<1x28x4xf32, #tpu.memory_space<vmem>>, vector<1x28x4xf32>
    %158 = vector.shape_cast %157 : vector<1x28x4xf32> to vector<28x4xf32>
    %159 = vector.shape_cast %156 : vector<28x4xf32> to vector<1x28x4xf32>
    tpu.vector_store %arg11[%c0_40, %c0_41, %c0_42], %159 {strides = array<i32>} : memref<1x28x4xf32, #tpu.memory_space<vmem>>, vector<1x28x4xf32>,
    return
  }
  func.func @transform_0(%arg0: i32, %arg1: i32) -> (i32, i32, i32) {
    %c0_i32 = arith.constant 0 : i32
    %c0_i32_0 = arith.constant 0 : i32
    %c0_i32_1 = arith.constant 0 : i32
    return %arg0, %c0_i32, %c0_i32_0 : i32, i32, i32
  }
  func.func @transform_1(%arg0: i32, %arg1: i32) -> (i32, i32) {
    %c0_i32 = arith.constant 0 : i32
    %c0_i32_0 = arith.constant 0 : i32
    %c0_i32_1 = arith.constant 0 : i32
    return %c0_i32, %c0_i32_0 : i32, i32
  }
  func.func @transform_2(%arg0: i32, %arg1: i32) -> (i32, i32) {
    %c0_i32 = arith.constant 0 : i32
    %c0_i32_0 = arith.constant 0 : i32
    %c0_i32_1 = arith.constant 0 : i32
    return %c0_i32, %c0_i32_0 : i32, i32
  }
  func.func @transform_3(%arg0: i32, %arg1: i32) -> (i32, i32) {
    %c0_i32 = arith.constant 0 : i32
    %c0_i32_0 = arith.constant 0 : i32
    %c0_i32_1 = arith.constant 0 : i32
    return %c0_i32, %c0_i32_0 : i32, i32
  }
  func.func @transform_4(%arg0: i32, %arg1: i32) -> (i32, i32) {
    %c0_i32 = arith.constant 0 : i32
    %c0_i32_0 = arith.constant 0 : i32
    %c0_i32_1 = arith.constant 0 : i32
    return %c0_i32, %c0_i32_0 : i32, i32
  }
  func.func @transform_5(%arg0: i32, %arg1: i32) -> (i32, i32) {
    %c0_i32 = arith.constant 0 : i32
    %c0_i32_0 = arith.constant 0 : i32
    %c0_i32_1 = arith.constant 0 : i32
    return %c0_i32, %c0_i32_0 : i32, i32
  }
  func.func @transform_6(%arg0: i32, %arg1: i32) -> (i32, i32) {
    %c0_i32 = arith.constant 0 : i32
    %c0_i32_0 = arith.constant 0 : i32
    %c0_i32_1 = arith.constant 0 : i32
    return %c0_i32, %c0_i32_0 : i32, i32
  }
  func.func @transform_7(%arg0: i32, %arg1: i32) -> (i32, i32, i32) {
    %c0_i32 = arith.constant 0 : i32
    %c0_i32_0 = arith.constant 0 : i32
    return %arg0, %c0_i32, %arg1 : i32, i32, i32
  }
  func.func @transform_8(%arg0: i32, %arg1: i32) -> (i32, i32, i32) {
    %c0_i32 = arith.constant 0 : i32
    %c0_i32_0 = arith.constant 0 : i32
    return %arg0, %c0_i32, %arg1 : i32, i32, i32
  }
  func.func @transform_9(%arg0: i32, %arg1: i32) -> (i32, i32, i32) {
    %c1_i32 = arith.constant 1 : i32
    %0 = arith.muli %arg0, %c1_i32 : i32
    %1 = arith.addi %0, %arg1 : i32
    %c0_i32 = arith.constant 0 : i32
    %c0_i32_0 = arith.constant 0 : i32
    %c0_i32_1 = arith.constant 0 : i32
    return %1, %c0_i32, %c0_i32_0 : i32, i32, i32
  }
}

module attributes {stable_mosaic.version = 11 : i64} {
  func.func @_fuse_kernel(%arg0: i32, %arg1: i32, %arg2: memref<1x28x128xf32, #tpu.memory_space<vmem>>, %arg3: memref<1x28x128xf32, #tpu.memory_space<vmem>>, %arg4: memref<28x1xf32, #tpu.memory_space<vmem>>, %arg5: memref<28x1xf32, #tpu.memory_space<vmem>>, %arg6: memref<28x1xf32, #tpu.memory_space<vmem>>, %arg7: memref<28x1xf32, #tpu.memory_space<vmem>>, %arg8: memref<1x28x128xf32, #tpu.memory_space<vmem>>) attributes {dimension_semantics = [#tpu.dimension_semantics<parallel>, #tpu.dimension_semantics<parallel>], iteration_bounds = array<i64: 2, 1>, scalar_prefetch = 0 : i64, scratch_operands = 0 : i64, tpu.core_type = #tpu.core_type<tc>, window_params = [{transform_indices = @transform_0, window_bounds = array<i64: 1, 28, 128>}, {transform_indices = @transform_1, window_bounds = array<i64: 1, 28, 128>}, {pipeline_mode = #tpu.pipeline_mode<synchronous>, transform_indices = @transform_2, window_bounds = array<i64: 28, 1>}, {pipeline_mode = #tpu.pipeline_mode<synchronous>, transform_indices = @transform_3, window_bounds = array<i64: 28, 1>}, {pipeline_mode = #tpu.pipeline_mode<synchronous>, transform_indices = @transform_4, window_bounds = array<i64: 28, 1>}, {pipeline_mode = #tpu.pipeline_mode<synchronous>, transform_indices = @transform_5, window_bounds = array<i64: 28, 1>}, {transform_indices = @transform_6, window_bounds = array<i64: 1, 28, 128>}]} {
    %c0 = arith.constant 0 : index
    %c0_0 = arith.constant 0 : index
    %c0_1 = arith.constant 0 : index
    %0 = vector.load %arg2[%c0, %c0_0, %c0_1] : memref<1x28x128xf32, #tpu.memory_space<vmem>>, vector<1x28x128xf32>
    %1 = vector.shape_cast %0 : vector<1x28x128xf32> to vector<28x128xf32>
    %c0_2 = arith.constant 0 : index
    %c0_3 = arith.constant 0 : index
    %2 = vector.load %arg4[%c0_2, %c0_3] : memref<28x1xf32, #tpu.memory_space<vmem>>, vector<28x1xf32>
    %3 = vector.broadcast %2 : vector<28x1xf32> to vector<28x128xf32>
    %4 = arith.mulf %1, %3 : vector<28x128xf32>
    %c0_4 = arith.constant 0 : index
    %c0_5 = arith.constant 0 : index
    %5 = vector.load %arg5[%c0_4, %c0_5] : memref<28x1xf32, #tpu.memory_space<vmem>>, vector<28x1xf32>
    %6 = vector.broadcast %5 : vector<28x1xf32> to vector<28x128xf32>
    %7 = arith.addf %4, %6 : vector<28x128xf32>
    %cst = arith.constant 0.000000e+00 : f32
    %8 = vector.broadcast %cst : f32 to vector<28x128xf32>
    %9 = arith.maximumf %7, %8 : vector<28x128xf32>
    %c0_6 = arith.constant 0 : index
    %c0_7 = arith.constant 0 : index
    %c0_8 = arith.constant 0 : index
    %10 = vector.load %arg3[%c0_6, %c0_7, %c0_8] : memref<1x28x128xf32, #tpu.memory_space<vmem>>, vector<1x28x128xf32>
    %11 = vector.shape_cast %10 : vector<1x28x128xf32> to vector<28x128xf32>
    %c0_9 = arith.constant 0 : index
    %c0_10 = arith.constant 0 : index
    %12 = vector.load %arg6[%c0_9, %c0_10] : memref<28x1xf32, #tpu.memory_space<vmem>>, vector<28x1xf32>
    %13 = vector.broadcast %12 : vector<28x1xf32> to vector<28x128xf32>
    %14 = arith.mulf %11, %13 : vector<28x128xf32>
    %c0_11 = arith.constant 0 : index
    %c0_12 = arith.constant 0 : index
    %15 = vector.load %arg7[%c0_11, %c0_12] : memref<28x1xf32, #tpu.memory_space<vmem>>, vector<28x1xf32>
    %16 = vector.broadcast %15 : vector<28x1xf32> to vector<28x128xf32>
    %17 = arith.addf %14, %16 : vector<28x128xf32>
    %18 = arith.addf %17, %9 : vector<28x128xf32>
    %cst_13 = arith.constant 0.000000e+00 : f32
    %19 = vector.broadcast %cst_13 : f32 to vector<28x128xf32>
    %20 = arith.maximumf %18, %19 : vector<28x128xf32>
    %c0_14 = arith.constant 0 : index
    %c0_15 = arith.constant 0 : index
    %c0_16 = arith.constant 0 : index
    %21 = vector.load %arg8[%c0_14, %c0_15, %c0_16] : memref<1x28x128xf32, #tpu.memory_space<vmem>>, vector<1x28x128xf32>
    %22 = vector.shape_cast %21 : vector<1x28x128xf32> to vector<28x128xf32>
    %23 = vector.shape_cast %20 : vector<28x128xf32> to vector<1x28x128xf32>
    tpu.vector_store %arg8[%c0_14, %c0_15, %c0_16], %23 {strides = array<i32>} : memref<1x28x128xf32, #tpu.memory_space<vmem>>, vector<1x28x128xf32>,
    return
  }
  func.func @transform_0(%arg0: i32, %arg1: i32) -> (i32, i32, i32) {
    %c0_i32 = arith.constant 0 : i32
    %c0_i32_0 = arith.constant 0 : i32
    return %arg0, %c0_i32, %arg1 : i32, i32, i32
  }
  func.func @transform_1(%arg0: i32, %arg1: i32) -> (i32, i32, i32) {
    %c0_i32 = arith.constant 0 : i32
    %c0_i32_0 = arith.constant 0 : i32
    return %arg0, %c0_i32, %arg1 : i32, i32, i32
  }
  func.func @transform_2(%arg0: i32, %arg1: i32) -> (i32, i32) {
    %c0_i32 = arith.constant 0 : i32
    %c0_i32_0 = arith.constant 0 : i32
    %c0_i32_1 = arith.constant 0 : i32
    return %c0_i32, %c0_i32_0 : i32, i32
  }
  func.func @transform_3(%arg0: i32, %arg1: i32) -> (i32, i32) {
    %c0_i32 = arith.constant 0 : i32
    %c0_i32_0 = arith.constant 0 : i32
    %c0_i32_1 = arith.constant 0 : i32
    return %c0_i32, %c0_i32_0 : i32, i32
  }
  func.func @transform_4(%arg0: i32, %arg1: i32) -> (i32, i32) {
    %c0_i32 = arith.constant 0 : i32
    %c0_i32_0 = arith.constant 0 : i32
    %c0_i32_1 = arith.constant 0 : i32
    return %c0_i32, %c0_i32_0 : i32, i32
  }
  func.func @transform_5(%arg0: i32, %arg1: i32) -> (i32, i32) {
    %c0_i32 = arith.constant 0 : i32
    %c0_i32_0 = arith.constant 0 : i32
    %c0_i32_1 = arith.constant 0 : i32
    return %c0_i32, %c0_i32_0 : i32, i32
  }
  func.func @transform_6(%arg0: i32, %arg1: i32) -> (i32, i32, i32) {
    %c0_i32 = arith.constant 0 : i32
    %c0_i32_0 = arith.constant 0 : i32
    return %arg0, %c0_i32, %arg1 : i32, i32, i32
  }
}

</mosaic_0001>

<bundles_post_ra>
// kernel: multires_block.3
= control target key start
LH: loop header
LB: loop body
LE: loop exit
PB: predicated region body
PF: predicated region fallthrough
CT: control target
= control target key end

     0   :  { %s655_s21 = smov 0   ;;  %s657_s22 = smov 0   ;;  %s749_s0 = inlined_call_operand.vmem [shape: f32[2,28,128], index: 0, kind: input, shape index: {}]   ;;  %s750_s1 = inlined_call_operand.vmem [shape: f32[2,28,128], index: 1, kind: input, shape index: {}]   ;;  %s751_s2 = inlined_call_operand.vmem [shape: f32[28,1], index: 2, kind: input, shape index: {}]   ;;  %s752_s3 = inlined_call_operand.vmem [shape: f32[28,1], index: 3, kind: input, shape index: {}]   ;;  %s753_s4 = inlined_call_operand.vmem [shape: f32[28,1], index: 4, kind: input, shape index: {}]   ;;  %s754_s5 = inlined_call_operand.vmem [shape: f32[28,1], index: 5, kind: input, shape index: {}]   ;;  %s755_s6 = inlined_call_operand.vmem [shape: f32[2,28,128], index: 6, kind: output, shape index: {}]  }
   0x1   :  { %s659_s23 = smov 0  }
   0x2 LB: > { %s28_s24 = sadd.s32 1, %s613_s22  ;;  %p555_p0 = scmp.ge.s32.totalorder %s617_s23, 1  ;;  %s617_s23 = sphi %s659_s23, %s16_s23   ;;  %s613_s22 = sphi %s657_s22, %s757_s22   ;;  %s609_s21 = sphi %s655_s21, %s756_s21  }
   0x3   : > { %p30_p1 = scmp.ge.s32.totalorder %s28_s24, 2  ;;  %p246_p2 = scmp.lt.s32.totalorder %s617_s23, 3 }
   0x5   : > { %s759_s24 = smov (%p30_p1, %s28_s24), 0  ;;  %p247_p3 = pnand %p555_p0, %p246_p2 }
   0x6   : > { %p290_p4 = scmp.lt.s32.totalorder (!%p247_p3), %s609_s21, 1 }
   0x7   : > { %250 = sbr.rel (%p247_p3) target bundleno = 177 (0xb1), region = 44 }
   0xc   : > { %v346_v0 = vld [vmem:[%s752_s3] sm:$0xff]  ;;  %v320_v1 = vld [vmem:[%s751_s2 + $0x10] sm:$0xff]  ;;  %v619_v3 = vmov 0   ;;  %v347_v4 = vld [vmem:[%s752_s3 + $0x8] sm:$0xff]  ;;  %s761_s21 = smov (!%p290_p4, %s609_s21), 1 }
   0xd   : > { %v318_v2 = vld [vmem:[%s751_s2] sm:$0xff]  ;;  %594 = vset.pattern.permute.xlu2 %v619_v3  ;;  %593 = vset.pattern.permute.xlu1 %v619_v3  ;;  %v321_v5 = vld [vmem:[%s751_s2 + $0x18] sm:$0xf]  ;;  %v319_v6 = vld [vmem:[%s751_s2 + $0x8] sm:$0xff]  ;;  %s564_s13 = sshll.u32 %s761_s21, 5 }
   0xe   : > { %592 = vset.pattern.permute.xlu0 %v619_v3  ;;  %352 = vperm.xlu2 %594, %v346_v0   ;;  %v382_v7 = vld [vmem:[%s753_s4] sm:$0xff]  ;;  %v349_v8 = vld [vmem:[%s752_s3 + $0x18] sm:$0xf]  ;;  %v348_v9 = vld [vmem:[%s752_s3 + $0x10] sm:$0xff]  ;;  %s297_s16 = scalar_lea.vmem %s749_s0, %s564_s13  ;;  %s731_s19 = scalar_lea.vmem %s750_s1, %s564_s13 }
   0xf   : > { %334 = vperm.xlu1 %593, %v320_v1   ;;  %324 = vperm.xlu0 %592, %v318_v2   ;;  %v385_v10 = vld [vmem:[%s753_s4 + $0x18] sm:$0xf]  ;;  %v384_v11 = vld [vmem:[%s753_s4 + $0x10] sm:$0xff]  ;;  %v383_v12 = vld [vmem:[%s753_s4 + $0x8] sm:$0xff]  ;;  %s313_s25 = scalar_lea.vmem %s755_s6, %s564_s13 }
  0x10   : > { %v412_v13 = vld [vmem:[%s754_s5 + $0x10] sm:$0xff]  ;;  %v411_v14 = vld [vmem:[%s754_s5 + $0x8] sm:$0xff]  ;;  %v410_v15 = vld [vmem:[%s754_s5] sm:$0xff] }
  0x11   : > { %v413_v16 = vld [vmem:[%s754_s5 + $0x18] sm:$0xf]  ;;  %v316_v27 = vld [vmem:[%s297_s16 + $0x10] sm:$0xff]  ;;  %v314_v29 = vld [vmem:[%s297_s16] sm:$0xff] }
  0x12   : > { %v315_v30 = vld [vmem:[%s297_s16 + $0x8] sm:$0xff]  ;;  %v380_v31 = vld [vmem:[%s731_s19 + $0x10] sm:$0xff]  ;;  %v378_v41 = vld [vmem:[%s731_s19] sm:$0xff] }
  0x13   : > { %v379_v42 = vld [vmem:[%s731_s19 + $0x8] sm:$0xff]  ;;  %v317_v49 = vld [vmem:[%s297_s16 + $0x18] sm:$0xf] }
  0x14   : > { %v381_v59 = vld [vmem:[%s731_s19 + $0x18] sm:$0xf] }
  0x16   : > { %357 = vperm.xlu2 %594, %v347_v4  }
  0x17   : > { %339 = vperm.xlu1 %593, %v321_v5   ;;  %329 = vperm.xlu0 %592, %v319_v6  }
  0x1e   : > { %388 = vperm.xlu2 %594, %v382_v7  }
  0x1f   : > { %367 = vperm.xlu1 %593, %v349_v8   ;;  %362 = vperm.xlu0 %592, %v348_v9  }
  0x26   : > { %403 = vperm.xlu2 %594, %v385_v10  }
  0x27   : > { %398 = vperm.xlu1 %593, %v384_v11   ;;  %393 = vperm.xlu0 %592, %v383_v12  }
  0x2e   : > { %426 = vperm.xlu2 %594, %v412_v13  }
  0x2f   : > { %421 = vperm.xlu1 %593, %v411_v14   ;;  %416 = vperm.xlu0 %592, %v410_v15  }
  0x37   : > { %431 = vperm.xlu0 %592, %v413_v16  }
  0x68   : > { %v353_v17 = vpop.permute.xlu2 %352 }
  0x70   : > { %v358_v18 = vpop.permute.xlu2 %357 }
  0x78   : > { %v389_v21 = vpop.permute.xlu2 %388 }
  0x79   : > { %v406_v46 = vmul.f32 %v389_v21, %v378_v41 }
  0x80   : > { %v404_v24 = vpop.permute.xlu2 %403 }
  0x81   : > { %v335_v19 = vpop.permute.xlu1 %334  ;;  %v325_v20 = vpop.permute.xlu0 %324  ;;  %v409_v63 = vmul.f32 %v404_v24, %v381_v59 }
  0x82   : > { %v344_v28 = vmul.f32 %v335_v19, %v316_v27  ;;  %v342_v35 = vmul.f32 %v325_v20, %v314_v29 }
  0x84   : > { %v370_v43 = vadd.f32 %v353_v17, %v342_v35 }
  0x86   : > { %v374_v52 = vmax.f32 %v370_v43, 0.0 }
  0x88   : > { %v427_v38 = vpop.permute.xlu2 %426 }
  0x89   : > { %v340_v22 = vpop.permute.xlu1 %339  ;;  %v330_v23 = vpop.permute.xlu0 %329 }
  0x8a   : > { %v343_v36 = vmul.f32 %v330_v23, %v315_v30  ;;  %v345_v56 = vmul.f32 %v340_v22, %v317_v49 }
  0x8c   : > { %v371_v44 = vadd.f32 %v358_v18, %v343_v36 }
  0x8e   : > { %v375_v53 = vmax.f32 %v371_v44, 0.0 }
  0x91   : > { %v368_v25 = vpop.permute.xlu1 %367  ;;  %v363_v26 = vpop.permute.xlu0 %362 }
  0x92   : > { %v372_v32 = vadd.f32 %v363_v26, %v344_v28  ;;  %v373_v60 = vadd.f32 %v368_v25, %v345_v56 }
  0x94   : > { %v376_v39 = vmax.f32 %v372_v32, 0.0  ;;  %v377_v1 = vmax.f32 %v373_v60, 0.0 }
  0x99   : > { %v399_v33 = vpop.permute.xlu1 %398  ;;  %v394_v34 = vpop.permute.xlu0 %393 }
  0x9a   : > { %v408_v37 = vmul.f32 %v399_v33, %v380_v31  ;;  %v407_v48 = vmul.f32 %v394_v34, %v379_v42 }
  0x9c   : > { %v436_v40 = vadd.f32 %v427_v38, %v408_v37 }
  0x9e   : > { %v440_v45 = vadd.f32 %v436_v40, %v376_v39 }
  0xa0   : > { %v444_v47 = vmax.f32 %v440_v45, 0.0 }
  0xa1   : > { %v422_v50 = vpop.permute.xlu1 %421  ;;  %v417_v51 = vpop.permute.xlu0 %416 }
  0xa2   : > { %448 = vst [vmem:[%s313_s25 + $0x10] sm:$0xff] %v444_v47  ;;  %v435_v54 = vadd.f32 %v422_v50, %v407_v48  ;;  %v434_v55 = vadd.f32 %v417_v51, %v406_v46 }
  0xa4   : > { %v439_v57 = vadd.f32 %v435_v54, %v375_v53  ;;  %v438_v58 = vadd.f32 %v434_v55, %v374_v52 }
  0xa6   : > { %v443_v61 = vmax.f32 %v439_v57, 0.0  ;;  %v442_v62 = vmax.f32 %v438_v58, 0.0 }
  0xa8   : > { %447 = vst [vmem:[%s313_s25 + $0x8] sm:$0xff] %v443_v61 }
  0xa9   : > { %446 = vst [vmem:[%s313_s25] sm:$0xff] %v442_v62  ;;  %v432_v0 = vpop.permute.xlu0 %431 }
  0xaa   : > { %v437_v2 = vadd.f32 %v432_v0, %v409_v63 }
  0xac   : > { %v441_v3 = vadd.f32 %v437_v2, %v377_v1 }
  0xae   : > { %v445_v4 = vmax.f32 %v441_v3, 0.0 }
  0xb0   : > { %449 = vst [vmem:[%s313_s25 + $0x18] sm:$0xf] %v445_v4 }
  0xb1 PF: > { %s16_s23 = sadd.s32 1, %s617_s23   ;;  %s756_s21 = smov %s613_s22 }
  0xb2   : > { %p13_p5 = scmp.ge.s32.totalorder %s16_s23, 4   ;;  %s757_s22 = smov %s759_s24 }
  0xb4   :  { %15 = sbr.rel (!%p13_p5) target bundleno = 2 (0x2), region = 77 }

// kernel: multires_block.2
= control target key start
LH: loop header
LB: loop body
LE: loop exit
PB: predicated region body
PF: predicated region fallthrough
CT: control target
= control target key end

     0   :  { %s1790_s30 = smov 0   ;;  %s1792_s10 = smov 0   ;;  %s2276_s0 = inlined_call_operand.vmem [shape: f32[2,8,170], index: 0, kind: input, shape index: {}]   ;;  %s2277_s1 = inlined_call_operand.vmem [shape: f32[32,120], index: 1, kind: input, shape index: {}]   ;;  %s2278_s2 = inlined_call_operand.vmem [shape: f32[32,1], index: 2, kind: input, shape index: {}]   ;;  %s2279_s3 = inlined_call_operand.vmem [shape: f32[8,60], index: 3, kind: input, shape index: {}]   ;;  %s2280_s4 = inlined_call_operand.vmem [shape: f32[8,1], index: 4, kind: input, shape index: {}]   ;;  %s2281_s5 = inlined_call_operand.vmem [shape: f32[16,120], index: 5, kind: input, shape index: {}]   ;;  %s2282_s6 = inlined_call_operand.vmem [shape: f32[16,1], index: 6, kind: input, shape index: {}]   ;;  %s2283_s7 = inlined_call_operand.vmem [shape: f32[2,28,128], index: 7, kind: output, shape index: {0}]   ;;  %s2284_s8 = inlined_call_operand.vmem [shape: f32[2,28,128], index: 8, kind: output, shape index: {1}]   ;;  %s2285_s9 = inlined_call_operand.vmem [shape: f32[2,28,4], index: 9, kind: output, shape index: {2}]  }
   0x1   :  { %s1794_s11 = smov 0  }
   0x2 LB: > { %s32_s12 = sadd.s32 1, %s1714_s10  ;;  %p1417_p0 = scmp.ge.s32.totalorder %s1718_s11, 1  ;;  %s1718_s11 = sphi %s1794_s11, %s20_s11   ;;  %s1714_s10 = sphi %s1792_s10, %s2315_s10   ;;  %s1710_s30 = sphi %s1790_s30, %s2314_s30  }
   0x3   : > { %p34_p1 = scmp.ge.s32.totalorder %s32_s12, 2  ;;  %p310_p2 = scmp.lt.s32.totalorder %s1718_s11, 3 }
   0x5   : > { %s2317_s12 = smov (%p34_p1, %s32_s12), 0  ;;  %p311_p3 = pnand %p1417_p0, %p310_p2 }
   0x6   : > { %p363_p4 = scmp.lt.s32.totalorder (!%p311_p3), %s1710_s30, 1  ;;  %s1720_s17 = smov (!%p311_p3), 114  }
   0x7   : > { %314 = sbr.rel (%p311_p3) target bundleno = 1605 (0x645), region = 48  ;;  %s2293_s18 = smov (!%p311_p3), 116  }
   0x8   : > { %s2297_s19 = smov (!%p311_p3), 118   ;;  %s2294_s20 = smov (!%p311_p3), 115  }
   0x9   : > { %s2296_s21 = smov (!%p311_p3), 117   ;;  %s2295_s22 = smov (!%p311_p3), 119  }
   0xa   : > { %s2298_s23 = smov (!%p311_p3), 120   ;;  %s1727_s24 = smov (!%p311_p3), 121  }
   0xb   : > { %s1728_s25 = smov (!%p311_p3), 122   ;;  %s2299_s26 = smov (!%p311_p3), 123  }
   0xc   : > { %s2319_s30 = smov (!%p363_p4, %s1710_s30), 1  ;;  %s1730_s27 = smov 124   ;;  %vm508_vm0 = vcmask 932864   ;;  %vm500_vm1 = vcmask 941056   ;;  %vm492_vm2 = vcmask 949248   ;;  %vm484_vm3 = vcmask 957440  }
   0xd   : > { %s1445_s13 = sshll.u32 %s2319_s30, 4  ;;  %s2290_s28 = smov 125   ;;  %vm476_vm4 = vcmask 965632   ;;  %vm468_vm5 = vcmask 973824   ;;  %vm460_vm6 = vcmask 982016   ;;  %vm452_vm7 = vcmask 990208  }
   0xe   : > { %s367_s16 = scalar_lea.vmem %s2276_s0, %s1445_s13  ;;  %s2286_s29 = smov 126   ;;  %vm444_vm8 = vcmask 998400   ;;  %vm436_vm9 = vcmask 1006592   ;;  %vm428_vm10 = vcmask 1014784   ;;  %vm420_vm11 = vcmask 1022976   ;;  %v519_v57 = vld [vmem:[%s2278_s2 + $0x18] sm:$0xff] }
   0xf   : > { %v1814_v0 = vld [vmem:[%s367_s16] sm:$0xff]  ;;  %v1816_v1 = vld [vmem:[%s367_s16 + $0x8] sm:$0xff]  ;;  %s2288_s13 = smov 127   ;;  %vm2300_vm12 = vcmask 1031168   ;;  %vm2292_vm13 = vcmask 1039360   ;;  %v1734_v60 = vmov 0  }
  0x10   : > { %v1493_v2 = vpack.i.bf16 %v1816_v1, %v1814_v0  ;;  %1563 = vset.pattern.permute.xlu2 %v1734_v60  ;;  %v512_v61 = vld [vmem:[%s2277_s1] sm:$0xff]  ;;  %1630 = vset.pattern.permute.xlu1 %v1734_v60  ;;  %v513_v62 = vld [vmem:[%s2277_s1 + $0x8] sm:$0xff]  ;;  %v514_v63 = vld [vmem:[%s2277_s1 + $0x10] sm:$0xff]  ;;  %s2303_s14 = smov 126   ;;  %s2307_s15 = smov 118  }
  0x11   : > { %1629 = vset.pattern.permute.xlu0 %v1734_v60 }
  0x12   : > { %1494 = vrot.lane.b32.xlu0 %v1493_v2, %s1720_s17  ;;  %1504 = vrot.lane.b32.xlu1 %v1493_v2, %s2293_s18 }
  0x13   : > { %1514 = vrot.lane.b32.xlu2 %v1493_v2, %s2297_s19 }
  0x1a   : > { %1499 = vrot.lane.b32.xlu0 %v1493_v2, %s2294_s20  ;;  %1509 = vrot.lane.b32.xlu1 %v1493_v2, %s2296_s21 }
  0x1b   : > { %1519 = vrot.lane.b32.xlu2 %v1493_v2, %s2295_s22 }
  0x22   : > { %1524 = vrot.lane.b32.xlu0 %v1493_v2, %s2298_s23  ;;  %1529 = vrot.lane.b32.xlu1 %v1493_v2, %s1727_s24 }
  0x23   : > { %1534 = vrot.lane.b32.xlu2 %v1493_v2, %s1728_s25 }
  0x2a   : > { %1539 = vrot.lane.b32.xlu0 %v1493_v2, %s2299_s26  ;;  %1544 = vrot.lane.b32.xlu1 %v1493_v2, %s1730_s27 }
  0x2b   : > { %1549 = vrot.lane.b32.xlu2 %v1493_v2, %s2290_s28  ;;  %s2301_s28 = smov 125  }
  0x32   : > { %1554 = vrot.lane.b32.xlu0 %v1493_v2, %s2286_s29  ;;  %1559 = vrot.lane.b32.xlu1 %v1493_v2, %s2288_s13  ;;  %s2302_s13 = smov 127  }
  0x33   : > { %537 = vperm.xlu2 %1563, %v519_v57  }
  0x6d   : > { %v1515_v3 = vpop.permute.xlu2 %1514 }
  0x6e   : > { %v1516_v20 = vunpack.i.l.bf16 %v1515_v3  ;;  %v1517_v22 = vunpack.i.h.bf16 %v1515_v3 }
  0x70   : > { %v477_v29 = vsel %vm476_vm4, %v1516_v20, %v1517_v22 }
  0x75   : > { %v1520_v8 = vpop.permute.xlu2 %1519 }
  0x76   : > { %v1521_v23 = vunpack.i.l.bf16 %v1520_v8  ;;  %v1522_v24 = vunpack.i.h.bf16 %v1520_v8 }
  0x78   : > { %v469_v31 = vsel %vm468_vm5, %v1521_v23, %v1522_v24 }
  0x7d   : > { %v1535_v19 = vpop.permute.xlu2 %1534 }
  0x7e   : > { %v1536_v33 = vunpack.i.l.bf16 %v1535_v19  ;;  %v1537_v35 = vunpack.i.h.bf16 %v1535_v19 }
  0x80   : > { %v445_v39 = vsel %vm444_vm8, %v1536_v33, %v1537_v35 }
  0x84   : > { %v1495_v4 = vpop.permute.xlu0 %1494  ;;  %v1505_v5 = vpop.permute.xlu1 %1504 }
  0x85   : > { %v1496_v6 = vunpack.i.l.bf16 %v1495_v4  ;;  %v1497_v7 = vunpack.i.h.bf16 %v1495_v4  ;;  %v1506_v12 = vunpack.i.l.bf16 %v1505_v5  ;;  %v1507_v15 = vunpack.i.h.bf16 %v1505_v5  ;;  %v1550_v37 = vpop.permute.xlu2 %1549 }
  0x86   : > { %v1551_v42 = vunpack.i.l.bf16 %v1550_v37  ;;  %v1552_v43 = vunpack.i.h.bf16 %v1550_v37  ;;  %v613_v5 = vlaneseq }
  0x87   : > { %582 = vmatpush.msra.mxu1 %v1497_v7  ;;  %v509_v9 = vsel %vm508_vm0, %v1496_v6, %v1497_v7  ;;  %v493_v21 = vsel %vm492_vm2, %v1506_v12, %v1507_v15 }
  0x88   : > { %553 = vmatpush.msra.mxu0 %v509_v9  ;;  %v421_v50 = vsel %vm420_vm11, %v1551_v42, %v1552_v43  ;;  %v1881_v6 = vand.u32 127, %v613_v5 }
  0x8a   : > { %v617_v9 = vadd.s32 4294967282, %v1881_v6 }
  0x8c   : > { %v1500_v10 = vpop.permute.xlu0 %1499  ;;  %v1510_v11 = vpop.permute.xlu1 %1509  ;;  %vm619_vm14 = vcmp.ge.s32.totalorder %v617_v9, 0  ;;  %vm621_vm15 = vcmp.lt.s32.totalorder %v617_v9, 16 }
  0x8d   : > { %v1501_v13 = vunpack.i.l.bf16 %v1500_v10  ;;  %v1502_v14 = vunpack.i.h.bf16 %v1500_v10  ;;  %v1511_v16 = vunpack.i.l.bf16 %v1510_v11  ;;  %v1512_v18 = vunpack.i.h.bf16 %v1510_v11  ;;  %v538_v10 = vpop.permute.xlu2 %537 }
  0x8f   : > { %583 = vmatpush.msra.mxu1 %v1502_v14  ;;  %v501_v17 = vsel %vm500_vm1, %v1501_v13, %v1502_v14  ;;  %v485_v25 = vsel %vm484_vm3, %v1511_v16, %v1512_v18 }
  0x90   : > { %554 = vmatpush.msra.mxu0 %v501_v17 }
  0x91   : > { %584 = vmatpush.msra.mxu1 %v1507_v15  ;;  %v1735_v15 = vmov 0.0  }
  0x92   : > { %555 = vmatpush.msra.mxu0 %v493_v21 }
  0x93   : > { %585 = vmatpush.msra.mxu1 %v1512_v18 }
  0x94   : > { %v1525_v26 = vpop.permute.xlu0 %1524  ;;  %556 = vmatpush.msra.mxu0 %v485_v25  ;;  %v1530_v27 = vpop.permute.xlu1 %1529  ;;  %v517_v25 = vld [vmem:[%s2278_s2 + $0x8] sm:$0xff] }
  0x95   : > { %v1526_v28 = vunpack.i.l.bf16 %v1525_v26  ;;  %586 = vmatpush.msra.mxu1 %v1517_v22  ;;  %v1527_v30 = vunpack.i.h.bf16 %v1525_v26  ;;  %v1531_v32 = vunpack.i.l.bf16 %v1530_v27  ;;  %v1532_v34 = vunpack.i.h.bf16 %v1530_v27  ;;  %v518_v26 = vld [vmem:[%s2278_s2 + $0x10] sm:$0xff]  ;;  %v516_v27 = vld [vmem:[%s2278_s2] sm:$0xff] }
  0x96   : > { %557 = vmatpush.msra.mxu0 %v477_v29  ;;  %v910_v29 = vld [vmem:[%s2282_s6 + $0x8] sm:$0xff] }
  0x97   : > { %587 = vmatpush.msra.mxu1 %v1522_v24  ;;  %v461_v36 = vsel %vm460_vm6, %v1526_v28, %v1527_v30  ;;  %v453_v38 = vsel %vm452_vm7, %v1531_v32, %v1532_v34  ;;  %v909_v28 = vld [vmem:[%s2282_s6] sm:$0xff] }
  0x98   : > { %558 = vmatpush.msra.mxu0 %v469_v31  ;;  %v749_v31 = vld [vmem:[%s2280_s4] sm:$0xff] }
  0x99   : > { %588 = vmatpush.msra.mxu1 %v1527_v30 }
  0x9a   : > { %559 = vmatpush.msra.mxu0 %v461_v36 }
  0x9b   : > { %589 = vmatpush.msra.mxu1 %v1532_v34 }
  0x9c   : > { %v1540_v40 = vpop.permute.xlu0 %1539  ;;  %560 = vmatpush.msra.mxu0 %v453_v38  ;;  %v1545_v41 = vpop.permute.xlu1 %1544 }
  0x9d   : > { %v1541_v44 = vunpack.i.l.bf16 %v1540_v40  ;;  %590 = vmatpush.msra.mxu1 %v1537_v35  ;;  %v1546_v45 = vunpack.i.l.bf16 %v1545_v41  ;;  %v1542_v46 = vunpack.i.h.bf16 %v1540_v40  ;;  %v1547_v47 = vunpack.i.h.bf16 %v1545_v41 }
  0x9e   : > { %561 = vmatpush.msra.mxu0 %v445_v39 }
  0x9f   : > { %591 = vmatpush.msra.mxu1 %v1542_v46  ;;  %v437_v48 = vsel %vm436_vm9, %v1541_v44, %v1542_v46  ;;  %v429_v49 = vsel %vm428_vm10, %v1546_v45, %v1547_v47 }
  0xa0   : > { %562 = vmatpush.msra.mxu0 %v437_v48 }
  0xa1   : > { %592 = vmatpush.msra.mxu1 %v1547_v47 }
  0xa2   : > { %563 = vmatpush.msra.mxu0 %v429_v49 }
  0xa3   : > { %593 = vmatpush.msra.mxu1 %v1552_v43 }
  0xa4   : > { %v1555_v51 = vpop.permute.xlu0 %1554  ;;  %v1560_v52 = vpop.permute.xlu1 %1559  ;;  %564 = vmatpush.msra.mxu0 %v421_v50 }
  0xa5   : > { %v1556_v53 = vunpack.i.l.bf16 %v1555_v51  ;;  %v1561_v54 = vunpack.i.l.bf16 %v1560_v52  ;;  %v1557_v55 = vunpack.i.h.bf16 %v1555_v51  ;;  %v1562_v56 = vunpack.i.h.bf16 %v1560_v52 }
  0xa7   : > { %594 = vmatpush.msra.mxu1 %v1557_v55  ;;  %v413_v58 = vsel %vm2300_vm12, %v1556_v53, %v1557_v55  ;;  %v405_v59 = vsel %vm2292_vm13, %v1561_v54, %v1562_v56  ;;  %vm623_vm13 = vmand %vm619_vm14, %vm621_vm15  ;;  %vm2304_vm14 = vcmask 1039360   ;;  %vm755_vm15 = vcmask 490496  }
  0xa8   : > { %565 = vmatpush.msra.mxu0 %v413_v58  ;;  %v1434_v16 = vsel %vm623_vm13, 1.0, %v1735_v15  ;;  %vm733_vm13 = vcmask 1043456  }
  0xa9   : > { %595 = vmatpush.msra.mxu1 %v1562_v56 }
  0xaa   : > { %566 = vmatpush.msra.mxu0 %v405_v59 }
  0xab   : > { %596 = vmatpush.msra.mxu1 %v1816_v1 }
  0xac   : > { %567 = vmatpush.msra.mxu0 %v1814_v0  ;;  %1430 = vmatmul.msk.f32.vlgmr.msra.gmra.mxu1 %vm460_vm6, %v512_v61  ;;  %v515_v0 = vld [vmem:[%s2277_s1 + $0x18] sm:$0xff] }
  0xad   : > { %1426 = vmatmul.msk.f32.vlgmr.msra.gmra.mxu0 %vm460_vm6, %v512_v61 }
  0xb4   : > { %1431 = vmatmul.msk.f32.gmra.mxu1 %vm460_vm6, %v513_v62 }
  0xb5   : > { %1427 = vmatmul.msk.f32.gmra.mxu0 %vm460_vm6, %v513_v62 }
  0xbc   : > { %1432 = vmatmul.msk.f32.gmra.mxu1 %vm460_vm6, %v514_v63 }
  0xbd   : > { %1428 = vmatmul.msk.f32.gmra.mxu0 %vm460_vm6, %v514_v63 }
  0xc4   : > { %1433 = vmatmul.msk.f32.gmra.mxu1 %vm460_vm6, %v515_v0 }
  0xc5   : > { %1429 = vmatmul.msk.f32.gmra.mxu0 %vm460_vm6, %v515_v0 }
 0x129   : > { %v1873_v1 = vpop.f32.mrf.mxu1 }
 0x12a   : > { %v1875_v2 = vpop.f32.mrf.mxu0 }
 0x131   : > { %v1877_v3 = vpop.f32.mrf.mxu1 }
 0x132   : > { %v1879_v4 = vpop.f32.mrf.mxu0 }
 0x139   : > { %v1883_v7 = vpop.f32.mrf.mxu1 }
 0x13a   : > { %v1885_v8 = vpop.f32.mrf.mxu0 }
 0x141   : > { %v607_v11 = vpop.f32.mrf.mxu1 }
 0x142   : > { %v578_v12 = vpop.f32.mrf.mxu0  ;;  %v1888_v13 = vadd.f32 %v607_v11, %v538_v10 }
 0x143   : > { %v1890_v14 = vadd.f32 %v578_v12, %v538_v10 }
 0x144   : > { %v611_v17 = vmax.f32 %v1888_v13, 0.0 }
 0x145   : > { %v610_v18 = vmax.f32 %v1890_v14, 0.0 }
 0x146   : > { %v1895_v19 = vmul.f32 0.0, %v611_v17 }
 0x147   : > { %v1897_v20 = vmul.f32 %v1434_v16, %v610_v18 }
 0x148   : > { %v1905_v22 = vrot.slane %v1895_v19, 4 }
 0x149   : > { %v1574_v21 = vpack.i.bf16 %v1895_v19, %v1897_v20  ;;  %v1912_v23 = vrot.slane %v1897_v20, 4 }
 0x14b   : > { %1575 = vrot.lane.b32.xlu1 %v1574_v21, %s2295_s22  ;;  %1570 = vrot.lane.b32.xlu2 %v1574_v21, %s2296_s21  ;;  %v1594_v24 = vpack.i.bf16 %v1905_v22, %v1912_v23  ;;  %s1736_s21 = smov 14   ;;  %s2016_s22 = sshll.u32 %s2319_s30, 5 }
 0x14c   : > { %1565 = vrot.lane.b32.xlu0 %v1574_v21, %s2294_s20  ;;  %s2022_s29 = scalar_lea.vmem %s2283_s7, %s2016_s22  ;;  %s2309_s20 = smov 119  }
 0x153   : > { %730 = vrot.lane.b32.xlu1 %v1905_v22, %s1720_s17  ;;  %1585 = vrot.lane.b32.xlu2 %v1574_v21, %s2299_s26 }
 0x154   : > { %1580 = vrot.lane.b32.xlu0 %v1574_v21, %s1727_s24 }
 0x15b   : > { %1595 = vrot.lane.b32.xlu1 %v1594_v24, %s2297_s19  ;;  %1590 = vrot.lane.b32.xlu2 %v1594_v24, %s2293_s18  ;;  %s2075_s18 = scalar_lea.vmem %s2284_s8, %s2016_s22  ;;  %s2308_s19 = smov 117  }
 0x15c   : > { %728 = vrot.lane.b32.xlu0 %v1912_v23, %s1720_s17 }
 0x163   : > { %1610 = vrot.lane.b32.xlu1 %v1594_v24, %s1730_s27  ;;  %1605 = vrot.lane.b32.xlu2 %v1594_v24, %s1728_s25 }
 0x164   : > { %1600 = vrot.lane.b32.xlu0 %v1594_v24, %s2298_s23 }
 0x16b   : > { %1620 = vrot.lane.b32.xlu1 %v1574_v21, %s2301_s28  ;;  %1625 = vrot.lane.b32.xlu2 %v1574_v21, %s2302_s13 }
 0x16c   : > { %1615 = vrot.lane.b32.xlu0 %v1594_v24, %s2303_s14 }
 0x173   : > { %527 = vperm.xlu1 %1630, %v517_v25   ;;  %532 = vperm.xlu2 %1563, %v518_v26  }
 0x174   : > { %522 = vperm.xlu0 %1629, %v516_v27  }
 0x17b   : > { %913 = vperm.xlu2 %1563, %v909_v28   ;;  %752 = vperm.xlu1 %1630, %v749_v31  }
 0x17c   : > { %918 = vperm.xlu0 %1629, %v910_v29  }
 0x1a5   : > { %v1571_v30 = vpop.permute.xlu2 %1570 }
 0x1a6   : > { %v1573_v42 = vunpack.i.h.bf16 %v1571_v30  ;;  %v1572_v43 = vunpack.i.l.bf16 %v1571_v30 }
 0x1a8   : > { %v711_v55 = vsel %vm484_vm3, %v1572_v43, %v1573_v42 }
 0x1ad   : > { %v1944_v32 = vpop.permute.xlu2 %1585 }
 0x1ae   : > { %v1588_v16 = vunpack.i.h.bf16 %v1944_v32  ;;  %v1587_v17 = vunpack.i.l.bf16 %v1944_v32 }
 0x1b5   : > { %v1591_v35 = vpop.permute.xlu2 %1590 }
 0x1b6   : > { %v1593_v37 = vunpack.i.h.bf16 %v1591_v35  ;;  %v1592_v44 = vunpack.i.l.bf16 %v1591_v35 }
 0x1b8   : > { %v718_v52 = vsel %vm492_vm2, %v1592_v44, %v1593_v37 }
 0x1bd   : > { %v1576_v33 = vpop.permute.xlu1 %1575  ;;  %v1606_v51 = vpop.permute.xlu2 %1605 }
 0x1be   : > { %v1566_v34 = vpop.permute.xlu0 %1565  ;;  %v1578_v58 = vunpack.i.h.bf16 %v1576_v33  ;;  %v1577_v59 = vunpack.i.l.bf16 %v1576_v33  ;;  %v1608_v63 = vunpack.i.h.bf16 %v1606_v51  ;;  %v1607_v0 = vunpack.i.l.bf16 %v1606_v51 }
 0x1bf   : > { %v1568_v36 = vunpack.i.h.bf16 %v1566_v34  ;;  %v1567_v41 = vunpack.i.l.bf16 %v1566_v34 }
 0x1c0   : > { %v697_v24 = vsel %vm468_vm5, %v1577_v59, %v1578_v58  ;;  %v676_v29 = vsel %vm444_vm8, %v1607_v0, %v1608_v63 }
 0x1c1   : > { %v747_v40 = vsel %vm733_vm13, %v1593_v37, %v1568_v36  ;;  %v725_v49 = vsel %vm500_vm1, %v1567_v41, %v1568_v36  ;;  %v669_v36 = vsel %vm436_vm9, %v1587_v17, %v1588_v16 }
 0x1c2   : > { %v746_v56 = vsel %vm733_vm13, %v718_v52, %v725_v49 }
 0x1c5   : > { %v731_v38 = vpop.permute.xlu1 %730  ;;  %v1626_v26 = vpop.permute.xlu2 %1625 }
 0x1c6   : > { %v1581_v39 = vpop.permute.xlu0 %1580  ;;  %1437 = vmatpush.msk.msra.mxu3 %vm733_vm13, %v731_v38  ;;  %v1628_v32 = vunpack.i.h.bf16 %v1626_v26  ;;  %v1627_v33 = vunpack.i.l.bf16 %v1626_v26 }
 0x1c7   : > { %v1583_v60 = vunpack.i.h.bf16 %v1581_v39  ;;  %v1582_v61 = vunpack.i.l.bf16 %v1581_v39 }
 0x1c8   : > { %792 = vmatpush.msra.mxu3 %v747_v40  ;;  %v735_v49 = vsel %vm733_vm13, %v1905_v22, %v1628_v32 }
 0x1c9   : > { %v683_v25 = vsel %vm452_vm7, %v1582_v61, %v1583_v60  ;;  %v741_v28 = vsel %vm733_vm13, %v1608_v63, %v1583_v60 }
 0x1ca   : > { %v740_v31 = vsel %vm733_vm13, %v676_v29, %v683_v25 }
 0x1cd   : > { %v1596_v45 = vpop.permute.xlu1 %1595  ;;  %v533_v22 = vpop.permute.xlu2 %532 }
 0x1ce   : > { %v1598_v46 = vunpack.i.h.bf16 %v1596_v45  ;;  %v1597_v47 = vunpack.i.l.bf16 %v1596_v45  ;;  %v729_v48 = vpop.permute.xlu0 %728 }
 0x1cf   : > { %v732_v50 = vsel %vm508_vm0, %v729_v48, %v731_v38  ;;  %v748_v48 = vld [vmem:[%s2279_s3] sm:$0xff] }
 0x1d0   : > { %1435 = vmatpush.msk.msra.mxu2 %vm733_vm13, %v732_v50  ;;  %v745_v53 = vsel %vm733_vm13, %v1598_v46, %v1573_v42  ;;  %v704_v54 = vsel %vm476_vm4, %v1597_v47, %v1598_v46  ;;  %v641_v46 = vsel %vm2304_vm14, %v1627_v33, %v1628_v32  ;;  %vm1001_vm14 = vcmp.lt.s32.totalorder %v1881_v6, 16 }
 0x1d1   : > { %793 = vmatpush.msra.mxu3 %v745_v53  ;;  %v744_v57 = vsel %vm733_vm13, %v704_v54, %v711_v55  ;;  %v734_v50 = vsel %vm733_vm13, %v1912_v23, %v641_v46  ;;  %v1990_v23 = vadd.f32 %v1883_v7, %v533_v22 }
 0x1d2   : > { %772 = vmatpush.msra.mxu2 %v746_v56  ;;  %v576_v56 = vadd.f32 %v1885_v8, %v533_v22 }
 0x1d4   : > { %773 = vmatpush.msra.mxu2 %v744_v57 }
 0x1d5   : > { %v1611_v62 = vpop.permute.xlu1 %1610 }
 0x1d6   : > { %v1601_v5 = vpop.permute.xlu0 %1600  ;;  %v1613_v9 = vunpack.i.h.bf16 %v1611_v62  ;;  %v1612_v10 = vunpack.i.l.bf16 %v1611_v62 }
 0x1d7   : > { %v1603_v11 = vunpack.i.h.bf16 %v1601_v5  ;;  %v1602_v12 = vunpack.i.l.bf16 %v1601_v5 }
 0x1d8   : > { %v662_v30 = vsel %vm428_vm10, %v1612_v10, %v1613_v9  ;;  %v739_v35 = vsel %vm733_vm13, %v1613_v9, %v1588_v16  ;;  %v807_v9 = vadd.s32 4294967289, %v1881_v6 }
 0x1d9   : > { %v743_v18 = vsel %vm733_vm13, %v1603_v11, %v1578_v58  ;;  %v690_v21 = vsel %vm460_vm6, %v1602_v12, %v1603_v11  ;;  %v738_v40 = vsel %vm733_vm13, %v662_v30, %v669_v36 }
 0x1da   : > { %794 = vmatpush.msra.mxu3 %v743_v18  ;;  %v742_v27 = vsel %vm733_vm13, %v690_v21, %v697_v24 }
 0x1db   : > { %774 = vmatpush.msra.mxu2 %v742_v27 }
 0x1dc   : > { %795 = vmatpush.msra.mxu3 %v741_v28 }
 0x1dd   : > { %775 = vmatpush.msra.mxu2 %v740_v31  ;;  %v1621_v34 = vpop.permute.xlu1 %1620 }
 0x1de   : > { %v1623_v37 = vunpack.i.h.bf16 %v1621_v34  ;;  %v1622_v38 = vunpack.i.l.bf16 %v1621_v34  ;;  %v1616_v39 = vpop.permute.xlu0 %1615  ;;  %796 = vmatpush.msra.mxu3 %v739_v35 }
 0x1df   : > { %v1618_v41 = vunpack.i.h.bf16 %v1616_v39  ;;  %v1617_v42 = vunpack.i.l.bf16 %v1616_v39  ;;  %776 = vmatpush.msra.mxu2 %v738_v40 }
 0x1e0   : > { %v655_v43 = vsel %vm420_vm11, %v1622_v38, %v1623_v37 }
 0x1e1   : > { %v737_v44 = vsel %vm733_vm13, %v1618_v41, %v1623_v37  ;;  %v648_v45 = vsel %vm2300_vm12, %v1617_v42, %v1618_v41 }
 0x1e2   : > { %797 = vmatpush.msra.mxu3 %v737_v44  ;;  %v736_v47 = vsel %vm733_vm13, %v648_v45, %v655_v43 }
 0x1e3   : > { %777 = vmatpush.msra.mxu2 %v736_v47 }
 0x1e4   : > { %798 = vmatpush.msra.mxu3 %v735_v49 }
 0x1e5   : > { %778 = vmatpush.msra.mxu2 %v734_v50  ;;  %1438 = vmatmul.msk.f32.vlgmr.msra.gmra.mxu3 %vm755_vm15, %v748_v48  ;;  %v528_v51 = vpop.permute.xlu1 %527 }
 0x1e6   : > { %v573_v52 = vadd.f32 %v1879_v4, %v528_v51  ;;  %v523_v53 = vpop.permute.xlu0 %522  ;;  %1436 = vmatmul.msk.f32.vlgmr.msra.gmra.mxu2 %vm755_vm15, %v748_v48  ;;  %v602_v4 = vadd.f32 %v1877_v3, %v528_v51  ;;  %vm809_vm15 = vcmp.ge.s32.totalorder %v807_v9, 0 }
 0x1e7   : > { %v570_v54 = vadd.f32 %v1875_v2, %v523_v53  ;;  %v599_v55 = vadd.f32 %v1873_v1, %v523_v53  ;;  %v2006_v1 = vsel %vm1001_vm14, 1.0, %v1735_v15  ;;  %v2011_v2 = vpop.permute.xlu2 %913  ;;  %vm811_vm14 = vcmp.lt.s32.totalorder %v807_v9, 16 }
 0x1e8   : > { %964 = vrot.lane.b32.xlu0 %v573_v52, %s1720_s17  ;;  %vm813_vm12 = vmand %vm809_vm15, %vm811_vm14 }
 0x1e9   : > { %962 = vrot.lane.b32.xlu2 %v599_v55, %s1720_s17  ;;  %960 = vrot.lane.b32.xlu1 %v570_v54, %s1720_s17  ;;  %v1439_v27 = vsel %vm813_vm12, 1.0, %v1735_v15 }
 0x1ed   : > { %v753_v57 = vpop.permute.xlu1 %752 }
 0x1ee   : > { %v2013_v8 = vpop.permute.xlu0 %918 }
 0x1f0   : > { %970 = vrot.lane.b32.xlu0 %v1990_v23, %s1720_s17 }
 0x1f1   : > { %968 = vrot.lane.b32.xlu2 %v576_v56, %s1720_s17  ;;  %966 = vrot.lane.b32.xlu1 %v602_v4, %s1720_s17 }
 0x1f8   : > { %988 = vrot.lane.b32.xlu0 %v1897_v20, %s1720_s17 }
 0x1f9   : > { %974 = vrot.lane.b32.xlu2 %v1888_v13, %s1720_s17  ;;  %972 = vrot.lane.b32.xlu1 %v1890_v14, %s1720_s17 }
 0x201   : > { %1006 = vrot.lane.b32.xlu2 %v2006_v1, %s1736_s21  ;;  %990 = vrot.lane.b32.xlu1 %v1895_v19, %s1720_s17  ;;  %s2310_s21 = smov 115  }
 0x243   : > { %v963_v3 = vpop.permute.xlu2 %962 }
 0x24b   : > { %v969_v7 = vpop.permute.xlu2 %968 }
 0x253   : > { %v975_v58 = vpop.permute.xlu2 %974 }
 0x25a   : > { %v965_v59 = vpop.permute.xlu0 %964 }
 0x25b   : > { %v2024_v60 = vpop.permute.xlu2 %1006  ;;  %v961_v61 = vpop.permute.xlu1 %960 }
 0x25c   : > { %v976_v62 = vsel %vm508_vm0, %v961_v61, %v963_v3  ;;  %v2028_v63 = vmul.f32 %v2024_v60, %v573_v52  ;;  %v2031_v0 = vmul.f32 %v2024_v60, %v599_v55  ;;  %v2034_v5 = vmul.f32 %v2024_v60, %v570_v54 }
 0x25d   : > { %984 = vst [vmem:[%s2022_s29] sm:$0xff] %v976_v62  ;;  %v2048_v17 = vmul.f32 %v2024_v60, %v576_v56  ;;  %v2052_v18 = vmul.f32 %v2024_v60, %v602_v4  ;;  %v2092_v36 = vmul.f32 %v2024_v60, %v1888_v13  ;;  %v1015_v37 = vmul.f32 %v2024_v60, %v1890_v14 }
 0x25e   : > { %1029 = vrot.lane.b32.xlu2 %v2028_v63, %s1720_s17  ;;  %1027 = vrot.lane.b32.xlu1 %v2031_v0, %s1720_s17  ;;  %v2102_v38 = vmul.f32 %v2024_v60, %v1990_v23  ;;  %v1059_v22 = vmul.f32 %v2031_v0, %v2031_v0 }
 0x25f   : > { %1025 = vrot.lane.b32.xlu0 %v2034_v5, %s1720_s17  ;;  %v1064_v61 = vmul.f32 %v1015_v37, %v1015_v37 }
 0x262   : > { %v971_v10 = vpop.permute.xlu0 %970 }
 0x263   : > { %v967_v11 = vpop.permute.xlu1 %966  ;;  %v978_v12 = vsel %vm508_vm0, %v969_v7, %v971_v10  ;;  %v1061_v7 = vmul.f32 %v2052_v18, %v2052_v18 }
 0x264   : > { %v977_v16 = vsel %vm508_vm0, %v965_v59, %v967_v11  ;;  %986 = vst [vmem:[%s2022_s29 + $0x10] sm:$0xff] %v978_v12 }
 0x265   : > { %985 = vst [vmem:[%s2022_s29 + $0x8] sm:$0xff] %v977_v16 }
 0x266   : > { %1033 = vrot.lane.b32.xlu1 %v2048_v17, %s1720_s17 }
 0x267   : > { %1031 = vrot.lane.b32.xlu0 %v2052_v18, %s1720_s17 }
 0x268   : > { %v800_v6 = vpop.f32.mrf.mxu3 }
 0x269   : > { %v801_v21 = vadd.f32 %v800_v6, %v753_v57  ;;  %v780_v24 = vpop.f32.mrf.mxu2 }
 0x26a   : > { %v781_v25 = vadd.f32 %v780_v24, %v753_v57  ;;  %v989_v15 = vpop.permute.xlu0 %988 }
 0x26b   : > { %v804_v26 = vmax.f32 %v801_v21, 0.0  ;;  %v973_v28 = vpop.permute.xlu1 %972  ;;  %v1060_v21 = vmul.f32 %v2028_v63, %v2028_v63 }
 0x26c   : > { %v803_v29 = vmax.f32 %v781_v25, 0.0  ;;  %v979_v30 = vsel %vm508_vm0, %v973_v28, %v975_v58 }
 0x26d   : > { %v2060_v31 = vmul.f32 0.0, %v804_v26  ;;  %987 = vst [vmem:[%s2022_s29 + $0x18] sm:$0xf] %v979_v30  ;;  %s1737_s29 = smov 7  }
 0x26e   : > { %v2063_v32 = vmul.f32 %v1439_v27, %v803_v29 }
 0x26f   : > { %861 = vrot.lane.b32.xlu0 %v2060_v31, %s1727_s24 }
 0x270   : > { %v1641_v33 = vpack.i.bf16 %v2060_v31, %v2063_v32 }
 0x272   : > { %1642 = vrot.lane.b32.xlu1 %v1641_v33, %s2301_s28  ;;  %1632 = vrot.lane.b32.xlu2 %v1641_v33, %s2302_s13  ;;  %s2305_s28 = smov 123   ;;  %s2306_s13 = smov 120  }
 0x273   : > { %v991_v34 = vpop.permute.xlu1 %990 }
 0x274   : > { %v992_v35 = vsel %vm508_vm0, %v989_v15, %v991_v34 }
 0x275   : > { %994 = vst [vmem:[%s2075_s18 - $0x4] sm:$0xf0] %v992_v35 }
 0x277   : > { %1637 = vrot.lane.b32.xlu0 %v1641_v33, %s2303_s14 }
 0x27a   : > { %1657 = vrot.lane.b32.xlu1 %v1641_v33, %s1728_s25  ;;  %1647 = vrot.lane.b32.xlu2 %v1641_v33, %s1730_s27  ;;  %s2311_s25 = smov 116  }
 0x27f   : > { %1652 = vrot.lane.b32.xlu0 %v1641_v33, %s2305_s28 }
 0x282   : > { %1662 = vrot.lane.b32.xlu1 %v1641_v33, %s2306_s13  ;;  %859 = vrot.lane.b32.xlu2 %v2063_v32, %s1727_s24 }
 0x287   : > { %1672 = vrot.lane.b32.xlu0 %v1641_v33, %s2307_s15 }
 0x28a   : > { %1677 = vrot.lane.b32.xlu1 %v1641_v33, %s2308_s19  ;;  %1667 = vrot.lane.b32.xlu2 %v1641_v33, %s2309_s20 }
 0x28f   : > { %1687 = vrot.lane.b32.xlu0 %v1641_v33, %s2310_s21 }
 0x292   : > { %1039 = vrot.lane.b32.xlu1 %v2092_v36, %s1720_s17  ;;  %1682 = vrot.lane.b32.xlu2 %v1641_v33, %s1720_s17 }
 0x297   : > { %1037 = vrot.lane.b32.xlu0 %v1015_v37, %s1720_s17 }
 0x29a   : > { %1692 = vrot.lane.b32.xlu1 %v1641_v33, %s2311_s25  ;;  %1035 = vrot.lane.b32.xlu2 %v2102_v38, %s1720_s17 }
 0x2b8   : > { %v1030_v13 = vpop.permute.xlu2 %1029 }
 0x2cc   : > { %v2107_v39 = vpop.permute.xlu2 %1632 }
 0x2d0   : > { %v1028_v40 = vpop.permute.xlu1 %1027 }
 0x2d1   : > { %v1026_v41 = vpop.permute.xlu0 %1025 }
 0x2d2   : > { %v1041_v42 = vsel %vm508_vm0, %v1026_v41, %v1028_v40  ;;  %v1063_v40 = vmul.f32 %v2102_v38, %v2102_v38 }
 0x2d3   : > { %1049 = vadd.xlane.f32.xlu2 %v1041_v42 }
 0x2d4   : > { %v2110_v14 = vpop.permute.xlu2 %1647 }
 0x2d8   : > { %v1034_v45 = vpop.permute.xlu1 %1033 }
 0x2d9   : > { %v1032_v43 = vpop.permute.xlu0 %1031 }
 0x2da   : > { %v1042_v44 = vsel %vm508_vm0, %v1030_v13, %v1032_v43 }
 0x2db   : > { %1051 = vadd.xlane.f32.xlu0 %v1042_v44 }
 0x2dc   : > { %v860_v46 = vpop.permute.xlu2 %859 }
 0x2e1   : > { %v862_v47 = vpop.permute.xlu0 %861 }
 0x2e2   : > { %v863_v48 = vsel %vm452_vm7, %v860_v46, %v862_v47  ;;  %v1650_v46 = vunpack.i.h.bf16 %v2110_v14  ;;  %v1649_v47 = vunpack.i.l.bf16 %v2110_v14 }
 0x2e3   : > { %995 = vst [vmem:[%s2075_s18 + $0x4] sm:$0xff] %v863_v48 }
 0x2e4   : > { %v2115_v49 = vpop.permute.xlu1 %1642  ;;  %v1668_v50 = vpop.permute.xlu2 %1667  ;;  %v845_v14 = vsel %vm428_vm10, %v1649_v47, %v1650_v46 }
 0x2e5   : > { %v1670_v33 = vunpack.i.h.bf16 %v1668_v50  ;;  %v1669_v15 = vunpack.i.l.bf16 %v1668_v50  ;;  %v1645_v38 = vunpack.i.h.bf16 %v2115_v49 }
 0x2e7   : > { %v875_v13 = vsel %vm468_vm5, %v1669_v15, %v1670_v33  ;;  %vm1239_vm5 = vcmask 23552  }
 0x2e9   : > { %v2117_v51 = vpop.permute.xlu0 %1637 }
 0x2ec   : > { %v2119_v52 = vpop.permute.xlu1 %1657  ;;  %v1683_v53 = vpop.permute.xlu2 %1682 }
 0x2ed   : > { %v1685_v54 = vunpack.i.h.bf16 %v1683_v53  ;;  %v1684_v55 = vunpack.i.l.bf16 %v1683_v53  ;;  %v1660_v41 = vunpack.i.h.bf16 %v2119_v52  ;;  %v1659_v42 = vunpack.i.l.bf16 %v2119_v52 }
 0x2ee   : > { %v1644_v53 = vunpack.i.l.bf16 %v2115_v49 }
 0x2ef   : > { %1076 = vrot.lane.b32.xlu0 %v1059_v22, %s1720_s17  ;;  %v905_v23 = vsel %vm508_vm0, %v1684_v55, %v1685_v54  ;;  %v857_v50 = vsel %vm444_vm8, %v1659_v42, %v1660_v41  ;;  %v1065_v54 = vmul.f32 %v2092_v36, %v2092_v36  ;;  %v1640_v55 = vunpack.i.h.bf16 %v2117_v51 }
 0x2f0   : > { %928 = vmatpush.msrb.mxu2 %v905_v23  ;;  %v1635_v22 = vunpack.i.h.bf16 %v2107_v39  ;;  %v1634_v23 = vunpack.i.l.bf16 %v2107_v39  ;;  %v839_v49 = vsel %vm420_vm11, %v1644_v53, %v1645_v38  ;;  %v1058_v36 = vmul.f32 %v2034_v5, %v2034_v5  ;;  %v908_v5 = vld [vmem:[%s2281_s5 + $0x8] sm:$0xff] }
 0x2f1   : > { %v1653_v56 = vpop.permute.xlu0 %1652  ;;  %v1062_v39 = vmul.f32 %v2048_v17, %v2048_v17 }
 0x2f2   : > { %v1655_v44 = vunpack.i.h.bf16 %v1653_v56 }
 0x2f4   : > { %v1663_v4 = vpop.permute.xlu1 %1662  ;;  %v1036_v3 = vpop.permute.xlu2 %1035 }
 0x2f5   : > { %v1043_v57 = vsel %vm508_vm0, %v1034_v45, %v1036_v3  ;;  %v1665_v35 = vunpack.i.h.bf16 %v1663_v4  ;;  %v1664_v37 = vunpack.i.l.bf16 %v1663_v4  ;;  %v1654_v45 = vunpack.i.l.bf16 %v1653_v56  ;;  %v907_v4 = vld [vmem:[%s2281_s5] sm:$0xff] }
 0x2f6   : > { %1053 = vadd.xlane.f32.xlu1 %v1043_v57 }
 0x2f7   : > { %1080 = vrot.lane.b32.xlu0 %v1061_v7, %s1720_s17  ;;  %v869_v43 = vsel %vm460_vm6, %v1664_v37, %v1665_v35  ;;  %v851_v52 = vsel %vm436_vm9, %v1654_v45, %v1655_v44 }
 0x2f9   : > { %v1673_v58 = vpop.permute.xlu0 %1672 }
 0x2fa   : > { %v1675_v28 = vunpack.i.h.bf16 %v1673_v58  ;;  %v1674_v29 = vunpack.i.l.bf16 %v1673_v58 }
 0x2fc   : > { %v1678_v59 = vpop.permute.xlu1 %1677  ;;  %v881_v63 = vsel %vm476_vm4, %v1674_v29, %v1675_v28  ;;  %vm1117_vm4 = vcmask 1047556  }
 0x2fd   : > { %v1680_v24 = vunpack.i.h.bf16 %v1678_v59  ;;  %v1679_v25 = vunpack.i.l.bf16 %v1678_v59 }
 0x2ff   : > { %1086 = vrot.lane.b32.xlu0 %v1064_v61, %s1720_s17  ;;  %v887_v34 = vsel %vm484_vm3, %v1679_v25, %v1680_v24  ;;  %v1107_v24 = vmul.f32 %v2024_v60, %v1897_v20  ;;  %v1108_v25 = vmul.f32 %v2024_v60, %v1895_v19  ;;  %vm1229_vm3 = vcmask 7168  }
 0x301   : > { %v1688_v62 = vpop.permute.xlu0 %1687 }
 0x302   : > { %v1690_v0 = vunpack.i.h.bf16 %v1688_v62  ;;  %v1689_v9 = vunpack.i.l.bf16 %v1688_v62 }
 0x304   : > { %v1040_v10 = vpop.permute.xlu1 %1039  ;;  %v899_v11 = vsel %vm500_vm1, %v1689_v9, %v1690_v0  ;;  %vm2312_vm1 = vcmask 1031168  }
 0x305   : > { %929 = vmatpush.msrb.mxu2 %v899_v11 }
 0x309   : > { %v1038_v12 = vpop.permute.xlu0 %1037 }
 0x30a   : > { %v1044_v16 = vsel %vm508_vm0, %v1038_v12, %v1040_v10 }
 0x30b   : > { %v1055_v18 = vsel %vm733_vm13, %v1044_v16, 0.0 }
 0x30c   : > { %v1693_v6 = vpop.permute.xlu1 %1692  ;;  %1056 = vadd.xlane.f32.xlu2 %v1055_v18 }
 0x30d   : > { %v1695_v26 = vunpack.i.h.bf16 %v1693_v6  ;;  %v1694_v27 = vunpack.i.l.bf16 %v1693_v6 }
 0x30f   : > { %1078 = vrot.lane.b32.xlu1 %v1060_v21, %s1720_s17  ;;  %v893_v30 = vsel %vm492_vm2, %v1694_v27, %v1695_v26  ;;  %vm2313_vm2 = vcmask 1039360   ;;  %v1122_v26 = vmul.f32 %v1108_v25, %v1108_v25 }
 0x310   : > { %930 = vmatpush.msrb.mxu2 %v893_v30 }
 0x312   : > { %931 = vmatpush.msrb.mxu2 %v887_v34 }
 0x314   : > { %932 = vmatpush.msrb.mxu2 %v881_v63 }
 0x316   : > { %933 = vmatpush.msrb.mxu2 %v875_v13 }
 0x317   : > { %1084 = vrot.lane.b32.xlu1 %v1063_v40, %s1720_s17  ;;  %v1121_v40 = vmul.f32 %v1107_v24, %v1107_v24 }
 0x318   : > { %934 = vmatpush.msrb.mxu2 %v869_v43 }
 0x31a   : > { %935 = vmatpush.msrb.mxu2 %v863_v48  ;;  %v1639_v48 = vunpack.i.l.bf16 %v2117_v51  ;;  %v827_v51 = vsel %vm2313_vm2, %v1634_v23, %v1635_v22 }
 0x31c   : > { %936 = vmatpush.msrb.mxu2 %v857_v50  ;;  %v833_v56 = vsel %vm2312_vm1, %v1639_v48, %v1640_v55 }
 0x31e   : > { %937 = vmatpush.msrb.mxu2 %v851_v52 }
 0x31f   : > { %1088 = vrot.lane.b32.xlu1 %v1065_v54, %s1720_s17 }
 0x320   : > { %938 = vmatpush.msrb.mxu2 %v845_v14 }
 0x322   : > { %939 = vmatpush.msrb.mxu2 %v839_v49 }
 0x324   : > { %1074 = vrot.lane.b32.xlu2 %v1058_v36, %s1720_s17  ;;  %940 = vmatpush.msrb.mxu2 %v833_v56 }
 0x326   : > { %941 = vmatpush.msrb.mxu2 %v827_v51 }
 0x328   : > { %942 = vmatpush.msrb.mxu2 %v2063_v32 }
 0x329   : > { %1440 = vmatmul.msk.f32.vlgmr.msrb.gmra.mxu2 %vm460_vm6, %v907_v4 }
 0x32c   : > { %1082 = vrot.lane.b32.xlu2 %v1062_v39, %s1720_s17 }
 0x331   : > { %1441 = vmatmul.msk.f32.gmra.mxu2 %vm460_vm6, %v908_v5  ;;  %vm1244_vm6 = vcmask 31744  }
 0x334   : > { %1134 = vrot.lane.b32.xlu2 %v2006_v1, %s1737_s29 }
 0x346   : > { %v2179_v7 = vpop.xlane.xlu2 %1049 }
 0x34e   : > { %v1052_v3 = vpop.xlane.xlu0 %1051 }
 0x361   : > { %v1077_v57 = vpop.permute.xlu0 %1076 }
 0x369   : > { %v1054_v58 = vpop.xlane.xlu1 %1053  ;;  %v1081_v61 = vpop.permute.xlu0 %1080 }
 0x371   : > { %v1087_v16 = vpop.permute.xlu0 %1086 }
 0x37f   : > { %v2181_v59 = vpop.xlane.xlu2 %1056 }
 0x381   : > { %v1079_v17 = vpop.permute.xlu1 %1078 }
 0x382   : > { %v1091_v62 = vsel %vm508_vm0, %v1079_v17, %v1081_v61 }
 0x383   : > { %1100 = vadd.xlane.f32.xlu2 %v1091_v62 }
 0x387   : > { %v1075_v0 = vpop.permute.xlu2 %1074 }
 0x388   : > { %v1090_v9 = vsel %vm508_vm0, %v1075_v0, %v1077_v57 }
 0x389   : > { %v1085_v10 = vpop.permute.xlu1 %1084  ;;  %1098 = vadd.xlane.f32.xlu0 %v1090_v9 }
 0x38f   : > { %v1083_v11 = vpop.permute.xlu2 %1082 }
 0x390   : > { %v1092_v12 = vsel %vm508_vm0, %v1083_v11, %v1085_v10 }
 0x391   : > { %v1089_v18 = vpop.permute.xlu1 %1088  ;;  %1102 = vadd.xlane.f32.xlu1 %v1092_v12 }
 0x392   : > { %v1093_v6 = vsel %vm508_vm0, %v1087_v16, %v1089_v18 }
 0x393   : > { %v1104_v21 = vsel %vm733_vm13, %v1093_v6, 0.0 }
 0x394   : > { %1105 = vadd.xlane.f32.xlu0 %v1104_v21 }
 0x397   : > { %v1135_v27 = vpop.permute.xlu2 %1134 }
 0x398   : > { %v1138_v28 = vmul.f32 %v1135_v27, %v2060_v31  ;;  %v1137_v33 = vmul.f32 %v1135_v27, %v2063_v32 }
 0x39a   : > { %v1150_v31 = vmul.f32 %v1138_v28, %v1138_v28  ;;  %v1149_v41 = vmul.f32 %v1137_v33, %v1137_v33 }
 0x39b   : > { %1111 = vrot.lane.b32.xlu2 %v1107_v24, %s1720_s17 }
 0x3a3   : > { %1127 = vrot.lane.b32.xlu2 %v1122_v26, %s1720_s17 }
 0x3aa   : > { %1113 = vrot.lane.b32.xlu1 %v1108_v25, %s1720_s17 }
 0x3ab   : > { %1143 = vrot.lane.b32.xlu2 %v1138_v28, %s1727_s24 }
 0x3ac   : > { %v944_v29 = vpop.f32.mrf.mxu2 }
 0x3ad   : > { %v2198_v30 = vadd.f32 %v944_v29, %v2011_v2 }
 0x3af   : > { %v950_v20 = vmax.f32 %v2198_v30, 0.0 }
 0x3b1   : > { %996 = vst [vmem:[%s2075_s18 + $0xc] sm:$0xff] %v950_v20  ;;  %v1161_v61 = vmul.f32 %v2006_v1, %v950_v20 }
 0x3b2   : > { %1141 = vrot.lane.b32.xlu1 %v1137_v33, %s1727_s24 }
 0x3b3   : > { %v1167_v17 = vmul.f32 %v1161_v61, %v1161_v61 }
 0x3b4   : > { %v947_v19 = vpop.f32.mrf.mxu2 }
 0x3b5   : > { %v948_v60 = vadd.f32 %v947_v19, %v2013_v8 }
 0x3b7   : > { %v951_v15 = vmax.f32 %v948_v60, 0.0 }
 0x3b9   : > { %997 = vst [vmem:[%s2075_s18 + $0x14] sm:$0xff] %v951_v15  ;;  %v1162_v14 = vmul.f32 %v2006_v1, %v951_v15  ;;  %s2236_s18 = scalar_lea.vmem %s2285_s9, %s2016_s22 }
 0x3ba   : > { %1155 = vrot.lane.b32.xlu1 %v1150_v31, %s1727_s24 }
 0x3bb   : > { %v1168_v22 = vmul.f32 %v1162_v14, %v1162_v14 }
 0x3f6   : > { %v1101_v34 = vpop.xlane.xlu2 %1100 }
 0x3f7   : > { %v2208_v2 = vsel %vm1229_vm3, %v1052_v3, %v1101_v34 }
 0x3fc   : > { %v1099_v46 = vpop.xlane.xlu0 %1098 }
 0x3fd   : > { %v1230_v0 = vsel %vm1229_vm3, %v2179_v7, %v1099_v46 }
 0x3fe   : > { %v1112_v32 = vpop.permute.xlu2 %1111 }
 0x404   : > { %v1103_v35 = vpop.xlane.xlu1 %1102 }
 0x405   : > { %v2211_v37 = vsel %vm1229_vm3, %v1054_v58, %v1103_v35 }
 0x406   : > { %v1128_v42 = vpop.permute.xlu2 %1127 }
 0x407   : > { %v2218_v47 = vpop.xlane.xlu0 %1105 }
 0x408   : > { %v1233_v19 = vsel %vm1229_vm3, %v2181_v59, %v2218_v47 }
 0x40e   : > { %v1144_v44 = vpop.permute.xlu2 %1143 }
 0x41c   : > { %v1114_v63 = vpop.permute.xlu1 %1113 }
 0x41d   : > { %v1115_v13 = vsel %vm508_vm0, %v1112_v32, %v1114_v63 }
 0x41e   : > { %v1118_v8 = vsel %vm1117_vm4, %v1115_v13, 0.0 }
 0x41f   : > { %1119 = vadd.xlane.f32.xlu0 %v1118_v8 }
 0x424   : > { %v1142_v43 = vpop.permute.xlu1 %1141 }
 0x425   : > { %v1145_v45 = vsel %vm452_vm7, %v1142_v43, %v1144_v44 }
 0x42c   : > { %v1156_v54 = vpop.permute.xlu1 %1155 }
 0x433   : > { %1125 = vrot.lane.b32.xlu0 %v1121_v40, %s1720_s17  ;;  %s1738_s17 = smov 2  }
 0x43b   : > { %1153 = vrot.lane.b32.xlu0 %v1149_v41, %s1727_s24  ;;  %s1739_s24 = smov 3  }
 0x465   : > { %1147 = vadd.xlane.f32.xlu0 %v1145_v45 }
 0x492   : > { %v1120_v50 = vpop.xlane.xlu0 %1119 }
 0x493   : > { %v1174_v49 = vrot.slane %v1120_v50, 4 }
 0x4a5   : > { %v1126_v38 = vpop.permute.xlu0 %1125 }
 0x4a6   : > { %v1129_v53 = vsel %vm508_vm0, %v1126_v38, %v1128_v42  ;;  %vm1234_vm0 = vcmask 15360  }
 0x4a7   : > { %v1131_v52 = vsel %vm1117_vm4, %v1129_v53, 0.0 }
 0x4a8   : > { %1132 = vadd.xlane.f32.xlu2 %v1131_v52 }
 0x4ad   : > { %v1154_v55 = vpop.permute.xlu0 %1153 }
 0x4ae   : > { %v1157_v48 = vsel %vm452_vm7, %v1154_v55, %v1156_v54  ;;  %vm1248_vm7 = vcmask 27648  }
 0x4af   : > { %1159 = vadd.xlane.f32.xlu0 %v1157_v48 }
 0x4b0   : > { %1165 = vadd.xlane.f32.xlu2 %v1162_v14 }
 0x4b8   : > { %1171 = vadd.xlane.f32.xlu2 %v1168_v22 }
 0x4d8   : > { %v1148_v23 = vpop.xlane.xlu0 %1147 }
 0x4d9   : > { %v1177_v36 = vrot.slane %v1148_v23, 4 }
 0x4db   : > { %v1185_v56 = vsel %vm733_vm13, %v1174_v49, %v1177_v36 }
 0x4dc   : > { %1203 = vrot.lane.b32.xlu0 %v1185_v56, %s1738_s17 }
 0x51b   : > { %v1133_v51 = vpop.xlane.xlu2 %1132 }
 0x51c   : > { %v1188_v39 = vrot.slane %v1133_v51, 4 }
 0x522   : > { %v1160_v4 = vpop.xlane.xlu0 %1159 }
 0x523   : > { %v1191_v5 = vrot.slane %v1160_v4, 4  ;;  %v1166_v3 = vpop.xlane.xlu2 %1165 }
 0x524   : > { %v1182_v57 = vrot.slane %v1166_v3, 4 }
 0x525   : > { %v1199_v58 = vsel %vm733_vm13, %v1188_v39, %v1191_v5 }
 0x526   : > { %1217 = vrot.lane.b32.xlu1 %v1199_v58, %s1739_s24  ;;  %1209 = vrot.lane.b32.xlu0 %v1182_v57, %s1738_s17 }
 0x52b   : > { %v1172_v18 = vpop.xlane.xlu2 %1171 }
 0x52c   : > { %v1196_v21 = vrot.slane %v1172_v18, 4 }
 0x54e   : > { %v1204_v62 = vpop.permute.xlu0 %1203 }
 0x54f   : > { %v1235_v9 = vsel %vm1234_vm0, %v1230_v0, %v1204_v62 }
 0x550   : > { %1163 = vadd.xlane.f32.xlu1 %v1161_v61 }
 0x558   : > { %1169 = vadd.xlane.f32.xlu1 %v1167_v17 }
 0x598   : > { %v1218_v10 = vpop.permute.xlu1 %1217  ;;  %v1210_v20 = vpop.permute.xlu0 %1209 }
 0x599   : > { %v1240_v1 = vsel %vm1239_vm5, %v1235_v9, %v1218_v10  ;;  %v1238_v60 = vsel %vm1234_vm0, %v1233_v19, %v1210_v20 }
 0x59a   : > { %1245 = vst.msk [vmem:[%s2236_s18] sm:$0xff] %vm1244_vm6, %v1240_v1 }
 0x5c3   : > { %v1164_v11 = vpop.xlane.xlu1 %1163 }
 0x5c4   : > { %v1181_v12 = vrot.slane %v1164_v11, 4 }
 0x5c6   : > { %v1183_v16 = vsel %vm733_vm13, %v1181_v12, %v1182_v57  ;;  %v1186_v7 = vsel %vm733_vm13, %v1177_v36, %v1181_v12 }
 0x5c7   : > { %1207 = vrot.lane.b32.xlu2 %v1183_v16, %s1738_s17  ;;  %1205 = vrot.lane.b32.xlu1 %v1186_v7, %s1738_s17 }
 0x5cb   : > { %v1170_v6 = vpop.xlane.xlu1 %1169 }
 0x5cc   : > { %v1195_v24 = vrot.slane %v1170_v6, 4 }
 0x5ce   : > { %v1200_v25 = vsel %vm733_vm13, %v1191_v5, %v1195_v24  ;;  %v1197_v26 = vsel %vm733_vm13, %v1195_v24, %v1196_v21 }
 0x5cf   : > { %1223 = vrot.lane.b32.xlu1 %v1196_v21, %s1739_s24  ;;  %1219 = vrot.lane.b32.xlu0 %v1200_v25, %s1739_s24 }
 0x5d0   : > { %1221 = vrot.lane.b32.xlu2 %v1197_v26, %s1739_s24 }
 0x621   : > { %v1208_v27 = vpop.permute.xlu2 %1207 }
 0x622   : > { %v1237_v28 = vsel %vm1234_vm0, %v2211_v37, %v1208_v27 }
 0x62a   : > { %v1222_v29 = vpop.permute.xlu2 %1221 }
 0x62b   : > { %v1242_v30 = vsel %vm1239_vm5, %v1237_v28, %v1222_v29 }
 0x62c   : > { %1247 = vst.msk [vmem:[%s2236_s18 + $0x10] sm:$0xff] %vm1244_vm6, %v1242_v30 }
 0x639   : > { %v1206_v33 = vpop.permute.xlu1 %1205 }
 0x63a   : > { %v1236_v15 = vsel %vm1234_vm0, %v2208_v2, %v1206_v33 }
 0x641   : > { %v1220_v31 = vpop.permute.xlu0 %1219  ;;  %v1224_v34 = vpop.permute.xlu1 %1223 }
 0x642   : > { %v1241_v35 = vsel %vm1239_vm5, %v1236_v15, %v1220_v31  ;;  %v1243_v37 = vsel %vm1239_vm5, %v1238_v60, %v1224_v34 }
 0x643   : > { %1246 = vst.msk [vmem:[%s2236_s18 + $0x8] sm:$0xff] %vm1244_vm6, %v1241_v35 }
 0x644   : > { %1249 = vst.msk [vmem:[%s2236_s18 + $0x18] sm:$0xf] %vm1248_vm7, %v1243_v37 }
 0x645 PF: > { %s20_s11 = sadd.s32 1, %s1718_s11   ;;  %s2314_s30 = smov %s1714_s10 }
 0x646   : > { %p17_p5 = scmp.ge.s32.totalorder %s20_s11, 4   ;;  %s2315_s10 = smov %s2317_s12 }
 0x648   :  { %19 = sbr.rel (!%p17_p5) target bundleno = 2 (0x2), region = 103 }

</bundles_post_ra>
